<compile_context>
chip_gen: v5e
topology: v5e:2x2
jax: 0.10.0
libtpu: 0.0.40
codegen_flags: <defaults>
</compile_context>

<pallas_src>
import functools

import jax
import jax.numpy as jnp
from jax import lax
from jax.experimental import pallas as pl
from jax.experimental.pallas import tpu as pltpu

_EPS = 1e-5
_TM1 = 1024  # row tile for the conv1 (1x1) matmul


# ----------------------------- Pallas kernels ------------------------------

def _conv1x1_bias_relu_kernel(x_ref, w_ref, b_ref, o_ref):
    """o = relu(x @ w + b); x:(tm,Ci) bf16, w:(Ci,Co) bf16, b:(1,Co) f32."""
    acc = jnp.dot(x_ref[...], w_ref[...], preferred_element_type=jnp.float32)
    o_ref[...] = jnp.maximum(acc + b_ref[...], 0.0).astype(o_ref.dtype)


def _fused_bottleneck_tail_kernel(g_ref, w2_ref, b2_ref, w3_ref, b3_ref, r_ref,
                                  *rest, tap_starts, tile_ho, ho, wq,
                                  downsample):
    """conv2(3x3,stride s)+BN+ReLU + conv3(1x1)+BN + shortcut + add + ReLU.

    g_ref : (rtot, p)  bf16  -- padded conv1 output, flat stride-parity layout;
            tap k lives at rows [tap_starts[k] + l, ...) for flat output pos l.
    w2_ref: (9p, p)    bf16  -- conv2 weights in im2col row order (tap, ci).
    r_ref : (L, Cin)   bf16 (downsample) or (L, 4p) bf16 (identity), L = ho*wq.
    out   : (L, 4p)    bf16  -- columns [Wo, Wq) of each row are junk, cropped
                                by the host inside the final transpose.
    """
    if downsample:
        wd_ref, bd_ref, out_ref = rest
    else:
        (out_ref,) = rest

    w2 = w2_ref[...]            # (9p, p)  bf16
    b2 = b2_ref[...]            # (1, p)   f32
    w3 = w3_ref[...]            # (p, 4p)  bf16
    b3 = b3_ref[...]            # (1, 4p)  f32
    if downsample:
        wd = wd_ref[...]        # (cin, 4p) bf16
        bd = bd_ref[...]        # (1, 4p)   f32

    n_tiles = -(-ho // tile_ho)
    for t in range(n_tiles):                      # static unroll over row tiles
        h0 = t * tile_ho
        th = min(tile_ho, ho - h0)                # static ragged tail
        tl = th * wq
        base = h0 * wq

        # In-VMEM im2col: the 9 tap windows are contiguous (static) row slices
        # of the bf16 slab; concatenating along channels turns conv2 into a
        # single (tl, 9p) @ (9p, p) MXU matmul instead of nine K=p matmuls.
        patch = jnp.concatenate(
            [g_ref[st + base:st + base + tl, :] for st in tap_starts], axis=-1)

        h2 = jnp.dot(patch, w2, preferred_element_type=jnp.float32)
        h2 = jnp.maximum(h2 + b2, 0.0).astype(jnp.bfloat16)        # (tl, p)

        y3 = jnp.dot(h2, w3, preferred_element_type=jnp.float32) + b3

        r = r_ref[base:base + tl, :]
        if downsample:
            sc = jnp.dot(r, wd, preferred_element_type=jnp.float32) + bd
        else:
            sc = r.astype(jnp.float32)

        out_ref[base:base + tl, :] = jnp.maximum(y3 + sc, 0.0).astype(
            out_ref.dtype)


# ----------------------------- Pallas wrappers ------------------------------

def conv1x1_bias_relu(x2d, w, b, out_dtype=jnp.bfloat16, tm=_TM1):
    """relu(x @ w + b), row-tiled; ragged last block handled by Pallas."""
    m, k = x2d.shape
    co = w.shape[1]
    tm = min(tm, m)
    return pl.pallas_call(
        _conv1x1_bias_relu_kernel,
        out_shape=jax.ShapeDtypeStruct((m, co), out_dtype),
        grid=(pl.cdiv(m, tm),),
        in_specs=[
            pl.BlockSpec((tm, k), lambda i: (i, 0)),
            pl.BlockSpec((k, co), lambda i: (0, 0)),
            pl.BlockSpec((1, co), lambda i: (0, 0)),
        ],
        out_specs=pl.BlockSpec((tm, co), lambda i: (i, 0)),
        compiler_params=pltpu.CompilerParams(
            dimension_semantics=("parallel",),
            vmem_limit_bytes=32 << 20),
    )(x2d, w, b)


def _fused_vmem_limit(rtot, L, p, c4, rch, tile_ho, wq, downsample):
    """Explicit VMEM budget for the fused kernel (blocks x2 + intermediates)."""
    bf, f4 = 2, 4
    weights = 9 * p * p * bf + p * c4 * bf + (p + c4) * f4
    if downsample:
        weights += rch * c4 * bf + c4 * f4
    blocks = rtot * p * bf + L * rch * bf + L * c4 * bf
    tl = tile_ho * wq
    interm = tl * (9 * p * bf + p * (f4 + bf) + 3 * c4 * f4)
    est = 2 * (weights + blocks) + interm           # x2: double-buffered blocks
    # 32 MiB floor (default scoped limit on v6e), 48 MiB cap (headroom on v7x).
    return int(min(48 << 20, max(32 << 20, est + (8 << 20))))


def fused_conv2_conv3(g, w2, b2, w3, b3, resid, wd, bd, *, tap_starts, tile_ho,
                      ho, wq, planes, c4, downsample, out_dtype=jnp.bfloat16):
    """Fused conv2+conv3+shortcut+residual+relu, one grid step per image."""
    n, rtot, _ = g.shape
    L = ho * wq
    rch = resid.shape[-1]
    kernel = functools.partial(
        _fused_bottleneck_tail_kernel, tap_starts=tuple(tap_starts),
        tile_ho=tile_ho, ho=ho, wq=wq, downsample=downsample)
    in_specs = [
        pl.BlockSpec((None, rtot, planes), lambda i: (i, 0, 0)),
        pl.BlockSpec((9 * planes, planes), lambda i: (0, 0)),
        pl.BlockSpec((1, planes), lambda i: (0, 0)),
        pl.BlockSpec((planes, c4), lambda i: (0, 0)),
        pl.BlockSpec((1, c4), lambda i: (0, 0)),
        pl.BlockSpec((None, L, rch), lambda i: (i, 0, 0)),
    ]
    args = [g, w2, b2, w3, b3, resid]
    if downsample:
        cin = wd.shape[0]
        in_specs += [pl.BlockSpec((cin, c4), lambda i: (0, 0)),
                     pl.BlockSpec((1, c4), lambda i: (0, 0))]
        args += [wd, bd]
    vmem_limit = _fused_vmem_limit(rtot, L, planes, c4, rch, tile_ho, wq,
                                   downsample)
    return pl.pallas_call(
        kernel,
        out_shape=jax.ShapeDtypeStruct((n, L, c4), out_dtype),
        grid=(n,),
        in_specs=in_specs,
        out_specs=pl.BlockSpec((None, L, c4), lambda i: (i, 0, 0)),
        compiler_params=pltpu.CompilerParams(
            dimension_semantics=("parallel",),
            vmem_limit_bytes=vmem_limit),
    )(*args)


# ----------------------------- parameter setup ------------------------------

def _fold_bn(w_oihw, gamma, beta, mean, var):
    scale = gamma / jnp.sqrt(var + _EPS)
    return w_oihw * scale[:, None, None, None], beta - mean * scale


def _folded_matrices(params, planes, downsample):
    """Fold BN into the convs; return bf16 matmul weights + f32 biases."""
    p, c4 = planes, 4 * planes
    w1, b1 = _fold_bn(params["w1"], *params["bn1"])
    w2, b2 = _fold_bn(params["w2"], *params["bn2"])
    w3, b3 = _fold_bn(params["w3"], *params["bn3"])
    f = {
        "w1m": jnp.transpose(w1[:, :, 0, 0]).astype(jnp.bfloat16),   # (cin,p)
        "b1": b1.reshape(1, p).astype(jnp.float32),
        # (o,i,ky,kx) -> (ky,kx,i,o) -> (9p, p); row = (ky*3+kx)*p + i (im2col)
        "w2m": jnp.transpose(w2, (2, 3, 1, 0)).reshape(9 * p, p)
               .astype(jnp.bfloat16),
        "b2": b2.reshape(1, p).astype(jnp.float32),
        "w3m": jnp.transpose(w3[:, :, 0, 0]).astype(jnp.bfloat16),   # (p,4p)
        "b3": b3.reshape(1, c4).astype(jnp.float32),
    }
    if downsample:
        wd, bd = _fold_bn(params["wd"], *params["bnd"])
        f["wdm"] = jnp.transpose(wd[:, :, 0, 0]).astype(jnp.bfloat16)
        f["bd"] = bd.reshape(1, c4).astype(jnp.float32)
    return f


def init_params(key, inplanes, planes, stride):
    """Deterministic synthetic params (torch OIHW conv weights + BN stats)."""
    downsample = (stride != 1) or (inplanes != planes * 4)
    keys = jax.random.split(key, 8)

    def conv_w(k, co, ci, kh, kw):
        return jax.random.normal(k, (co, ci, kh, kw), jnp.float32) * 0.1

    def bn(k, c):
        k1, k2, k3, k4 = jax.random.split(k, 4)
        gamma = jax.random.uniform(k1, (c,), jnp.float32, 0.5, 1.5)
        beta = jax.random.normal(k2, (c,), jnp.float32) * 0.1
        mean = jax.random.normal(k3, (c,), jnp.float32) * 0.1
        var = jax.random.uniform(k4, (c,), jnp.float32, 0.5, 1.5)
        return gamma, beta, mean, var

    p = {
        "w1": conv_w(keys[0], planes, inplanes, 1, 1), "bn1": bn(keys[1], planes),
        "w2": conv_w(keys[2], planes, planes, 3, 3), "bn2": bn(keys[3], planes),
        "w3": conv_w(keys[4], planes * 4, planes, 1, 1), "bn3": bn(keys[5], planes * 4),
    }
    if downsample:
        p["wd"] = conv_w(keys[6], planes * 4, inplanes, 1, 1)
        p["bnd"] = bn(keys[7], planes * 4)
    return p, downsample


# ----------------------------- host glue ------------------------------------

def _build_tap_layout(h1, s, hq, wq, rtot):
    """Pad conv1 output spatially by 1 and lay it out (stride-parity planes,
    flat) so every 3x3 tap is a contiguous row window.  bf16 throughout."""
    n, _, _, p = h1.shape
    h1p = jnp.pad(h1, ((0, 0), (1, 1), (1, 1), (0, 0)))
    if s == 1:
        g = h1p.reshape(n, hq * wq, p)
    else:
        parts = []
        for a in range(s):
            for b in range(s):
                sub = h1p[:, a::s, b::s, :][:, :hq, :wq, :]
                ph, pw = hq - sub.shape[1], wq - sub.shape[2]
                if ph or pw:
                    sub = jnp.pad(sub, ((0, 0), (0, ph), (0, pw), (0, 0)))
                parts.append(sub.reshape(n, hq * wq, p))
        g = jnp.concatenate(parts, axis=1)
    if rtot > g.shape[1]:       # tail slack so every tap window stays in-bounds
        g = jnp.pad(g, ((0, 0), (0, rtot - g.shape[1]), (0, 0)))
    return g


# ----------------------------- Bottleneck forward ---------------------------

def bottleneck_forward(x_nchw, params, planes, stride, downsample,
                       tile_ho=None):
    s = int(stride)
    p, c4 = planes, 4 * planes

    xb = jnp.transpose(x_nchw, (0, 2, 3, 1)).astype(jnp.bfloat16)   # NHWC bf16
    n, h, w, cin = xb.shape
    f = _folded_matrices(params, planes, downsample)

    # output spatial size of the 3x3 (pad=1) conv and the junk-column layout
    ho = (h - 1) // s + 1
    wo = (w - 1) // s + 1
    d = 2 // s
    hq, wq = ho + d, wo + d

    if tile_ho is None:                       # target ~256 slab rows per tile
        tile_ho = max(1, min(ho, max(1, 256 // wq)))
    tile_ho = max(1, min(int(tile_ho), ho))

    # tap start offsets in the flat stride-parity slab (tap = ky*3 + kx)
    tap_starts = []
    for ky in range(3):
        for kx in range(3):
            a, b = ky % s, kx % s
            tap_starts.append((a * s + b) * hq * wq
                              + (ky // s) * wq + (kx // s))
    rtot = max(s * s * hq * wq, max(tap_starts) + ho * wq)
    rtot = -(-rtot // 16) * 16

    # conv1: 1x1 + BN + ReLU (row-tiled Pallas matmul, bf16 output)
    h1 = conv1x1_bias_relu(xb.reshape(n * h * w, cin), f["w1m"], f["b1"],
                           out_dtype=jnp.bfloat16)
    h1 = h1.reshape(n, h, w, p)

    # TODO(synk): fuse this pad / stride-parity re-layout (and conv1 itself)
    # into the fused kernel to remove the remaining host-side HBM pass on h1.
    g = _build_tap_layout(h1, s, hq, wq, rtot)            # (n, rtot, p) bf16

    # shortcut input in the same (ho, wq) junk-column layout as the output
    r = xb[:, ::s, ::s, :] if downsample else xb          # (n, ho, wo, .)
    r = jnp.pad(r, ((0, 0), (0, 0), (0, wq - wo), (0, 0)))
    r = r.reshape(n, ho * wq, r.shape[-1])

    # fused conv2 + conv3 + shortcut + residual + ReLU
    out = fused_conv2_conv3(
        g, f["w2m"], f["b2"], f["w3m"], f["b3"], r,
        f.get("wdm"), f.get("bd"),
        tap_starts=tap_starts, tile_ho=tile_ho, ho=ho, wq=wq,
        planes=p, c4=c4, downsample=downsample)

    # crop junk columns; XLA fuses this with the NHWC->NCHW transpose below
    out = out.reshape(n, ho, wq, c4)[:, :, :wo, :]
    # TODO(synk): consumers that accept NHWC bf16 can skip this transpose/cast.
    return jnp.transpose(out, (0, 3, 1, 2)).astype(jnp.float32)     # NCHW f32


# ----------------------------- pure-JAX reference ---------------------------

def bottleneck_reference(x_nchw, params, planes, stride, downsample):
    """Eval-mode Bottleneck with the same folded bf16 weights / bf16
    activations (f32 math) so the comparison isolates kernel structure."""
    f32 = jnp.float32
    hi = lax.Precision.HIGHEST
    f = _folded_matrices(params, planes, downsample)
    x = jnp.transpose(x_nchw, (0, 2, 3, 1)).astype(jnp.bfloat16).astype(f32)

    h1 = jnp.maximum(
        jnp.einsum("nhwc,cp->nhwp", x, f["w1m"].astype(f32), precision=hi)
        + f["b1"], 0.0)
    h1 = h1.astype(jnp.bfloat16).astype(f32)     # kernel stores h1 in bf16

    w2 = f["w2m"].astype(f32).reshape(3, 3, planes, planes)         # HWIO
    h2 = lax.conv_general_dilated(
        h1, w2, (stride, stride), ((1, 1), (1, 1)),
        dimension_numbers=("NHWC", "HWIO", "NHWC"), precision=hi)
    h2 = jnp.maximum(h2 + f["b2"], 0.0)
    h2 = h2.astype(jnp.bfloat16).astype(f32)     # kernel casts h2 before conv3

    y3 = jnp.einsum("nhwc,cp->nhwp", h2, f["w3m"].astype(f32),
                    precision=hi) + f["b3"]
    if downsample:
        xs = x[:, ::stride, ::stride, :]
        sc = jnp.einsum("nhwc,cp->nhwp", xs, f["wdm"].astype(f32),
                        precision=hi) + f["bd"]
    else:
        sc = x
    out = jnp.maximum(y3 + sc, 0.0)
    return jnp.transpose(out, (0, 3, 1, 2))


# ----------------------------------- main -----------------------------------

if __name__ == "__main__":
    key = jax.random.PRNGKey(0)
    fwd = jax.jit(bottleneck_forward, static_argnums=(2, 3, 4, 5))

    # case 1: downsample path (stride=2), ragged row-tile split (3,3,2)
    n, inplanes, planes, stride, hw = 2, 16, 8, 2, 16
    kx, kp = jax.random.split(key)
    x = jax.random.normal(kx, (n, inplanes, hw, hw), jnp.float32)    # NCHW
    params, ds = init_params(kp, inplanes, planes, stride)
    out = jax.block_until_ready(fwd(x, params, planes, stride, ds, 3))
    ref = bottleneck_reference(x, params, planes, stride, ds)
    assert out.shape == (n, planes * 4, hw // stride, hw // stride)
    assert jnp.allclose(out, ref, atol=1e-2, rtol=2e-2), \
        float(jnp.max(jnp.abs(out - ref)))

    # case 2: identity shortcut (stride=1, inplanes == 4*planes), 2 even tiles
    inplanes2, planes2, stride2 = 32, 8, 1
    kx2, kp2 = jax.random.split(kp)
    x2 = jax.random.normal(kx2, (n, inplanes2, hw, hw), jnp.float32)
    params2, ds2 = init_params(kp2, inplanes2, planes2, stride2)
    out2 = jax.block_until_ready(fwd(x2, params2, planes2, stride2, ds2, 8))
    ref2 = bottleneck_reference(x2, params2, planes2, stride2, ds2)
    assert out2.shape == (n, planes2 * 4, hw, hw)
    assert jnp.allclose(out2, ref2, atol=1e-2, rtol=2e-2), \
        float(jnp.max(jnp.abs(out2 - ref2)))

    print("KERNEL_OK")
</pallas_src>

<mosaic_0001>
module attributes {stable_mosaic.version = 11 : i64} {
  func.func @_conv1x1_bias_relu_kernel(%arg0: i32, %arg1: memref<512x16xbf16, #tpu.memory_space<vmem>>, %arg2: memref<16x8xbf16, #tpu.memory_space<vmem>>, %arg3: memref<1x8xf32, #tpu.memory_space<vmem>>, %arg4: memref<512x8xbf16, #tpu.memory_space<vmem>>) attributes {dimension_semantics = [#tpu.dimension_semantics<parallel>], iteration_bounds = array<i64: 1>, scalar_prefetch = 0 : i64, scratch_operands = 0 : i64, tpu.core_type = #tpu.core_type<tc>, window_params = [{transform_indices = @transform_0, window_bounds = array<i64: 512, 16>}, {pipeline_mode = #tpu.pipeline_mode<synchronous>, transform_indices = @transform_1, window_bounds = array<i64: 16, 8>}, {pipeline_mode = #tpu.pipeline_mode<synchronous>, transform_indices = @transform_2, window_bounds = array<i64: 1, 8>}, {transform_indices = @transform_3, window_bounds = array<i64: 512, 8>}]} {
    %c0 = arith.constant 0 : index
    %c0_0 = arith.constant 0 : index
    %0 = vector.load %arg1[%c0, %c0_0] : memref<512x16xbf16, #tpu.memory_space<vmem>>, vector<512x16xbf16>
    %c0_1 = arith.constant 0 : index
    %c0_2 = arith.constant 0 : index
    %1 = vector.load %arg2[%c0_1, %c0_2] : memref<16x8xbf16, #tpu.memory_space<vmem>>, vector<16x8xbf16>
    %cst = arith.constant dense<0.000000e+00> : vector<512x8xf32>
    %2 = tpu.matmul %0, %1, %cst {dimension_numbers = #tpu.dot_dimension_numbers<[1], [0], [0], [1], [0, 0, 1, 1], [], []>} : vector<512x16xbf16>, vector<16x8xbf16>, vector<512x8xf32> -> vector<512x8xf32>
    %c0_3 = arith.constant 0 : index
    %c0_4 = arith.constant 0 : index
    %3 = vector.load %arg3[%c0_3, %c0_4] : memref<1x8xf32, #tpu.memory_space<vmem>>, vector<1x8xf32>
    %4 = vector.broadcast %3 : vector<1x8xf32> to vector<512x8xf32>
    %5 = arith.addf %2, %4 : vector<512x8xf32>
    %cst_5 = arith.constant 0.000000e+00 : f32
    %6 = vector.broadcast %cst_5 : f32 to vector<512x8xf32>
    %7 = arith.maximumf %5, %6 : vector<512x8xf32>
    %8 = arith.truncf %7 : vector<512x8xf32> to vector<512x8xbf16>
    %c0_6 = arith.constant 0 : index
    %c0_7 = arith.constant 0 : index
    %9 = vector.load %arg4[%c0_6, %c0_7] : memref<512x8xbf16, #tpu.memory_space<vmem>>, vector<512x8xbf16>
    tpu.vector_store %arg4[%c0_6, %c0_7], %8 {strides = array<i32>} : memref<512x8xbf16, #tpu.memory_space<vmem>>, vector<512x8xbf16>,
    return
  }
  func.func @transform_0(%arg0: i32) -> (i32, i32) {
    %c0_i32 = arith.constant 0 : i32
    %c0_i32_0 = arith.constant 0 : i32
    return %arg0, %c0_i32 : i32, i32
  }
  func.func @transform_1(%arg0: i32) -> (i32, i32) {
    %c0_i32 = arith.constant 0 : i32
    %c0_i32_0 = arith.constant 0 : i32
    %c0_i32_1 = arith.constant 0 : i32
    return %c0_i32, %c0_i32_0 : i32, i32
  }
  func.func @transform_2(%arg0: i32) -> (i32, i32) {
    %c0_i32 = arith.constant 0 : i32
    %c0_i32_0 = arith.constant 0 : i32
    %c0_i32_1 = arith.constant 0 : i32
    return %c0_i32, %c0_i32_0 : i32, i32
  }
  func.func @transform_3(%arg0: i32) -> (i32, i32) {
    %c0_i32 = arith.constant 0 : i32
    %c0_i32_0 = arith.constant 0 : i32
    return %arg0, %c0_i32 : i32, i32
  }
}

module attributes {stable_mosaic.version = 11 : i64} {
  func.func @_fused_bottleneck_tail_kernel(%arg0: i32, %arg1: memref<1x336x8xbf16, #tpu.memory_space<vmem>>, %arg2: memref<72x8xbf16, #tpu.memory_space<vmem>>, %arg3: memref<1x8xf32, #tpu.memory_space<vmem>>, %arg4: memref<8x32xbf16, #tpu.memory_space<vmem>>, %arg5: memref<1x32xf32, #tpu.memory_space<vmem>>, %arg6: memref<1x72x16xbf16, #tpu.memory_space<vmem>>, %arg7: memref<16x32xbf16, #tpu.memory_space<vmem>>, %arg8: memref<1x32xf32, #tpu.memory_space<vmem>>, %arg9: memref<1x72x32xbf16, #tpu.memory_space<vmem>>) attributes {dimension_semantics = [#tpu.dimension_semantics<parallel>], iteration_bounds = array<i64: 2>, scalar_prefetch = 0 : i64, scratch_operands = 0 : i64, tpu.core_type = #tpu.core_type<tc>, window_params = [{transform_indices = @transform_0, window_bounds = array<i64: 1, 336, 8>}, {pipeline_mode = #tpu.pipeline_mode<synchronous>, transform_indices = @transform_1, window_bounds = array<i64: 72, 8>}, {pipeline_mode = #tpu.pipeline_mode<synchronous>, transform_indices = @transform_2, window_bounds = array<i64: 1, 8>}, {pipeline_mode = #tpu.pipeline_mode<synchronous>, transform_indices = @transform_3, window_bounds = array<i64: 8, 32>}, {pipeline_mode = #tpu.pipeline_mode<synchronous>, transform_indices = @transform_4, window_bounds = array<i64: 1, 32>}, {transform_indices = @transform_5, window_bounds = array<i64: 1, 72, 16>}, {pipeline_mode = #tpu.pipeline_mode<synchronous>, transform_indices = @transform_6, window_bounds = array<i64: 16, 32>}, {pipeline_mode = #tpu.pipeline_mode<synchronous>, transform_indices = @transform_7, window_bounds = array<i64: 1, 32>}, {transform_indices = @transform_8, window_bounds = array<i64: 1, 72, 32>}]} {
    %c0 = arith.constant 0 : index
    %c0_0 = arith.constant 0 : index
    %0 = vector.load %arg2[%c0, %c0_0] : memref<72x8xbf16, #tpu.memory_space<vmem>>, vector<72x8xbf16>
    %c0_1 = arith.constant 0 : index
    %c0_2 = arith.constant 0 : index
    %1 = vector.load %arg3[%c0_1, %c0_2] : memref<1x8xf32, #tpu.memory_space<vmem>>, vector<1x8xf32>
    %c0_3 = arith.constant 0 : index
    %c0_4 = arith.constant 0 : index
    %2 = vector.load %arg4[%c0_3, %c0_4] : memref<8x32xbf16, #tpu.memory_space<vmem>>, vector<8x32xbf16>
    %c0_5 = arith.constant 0 : index
    %c0_6 = arith.constant 0 : index
    %3 = vector.load %arg5[%c0_5, %c0_6] : memref<1x32xf32, #tpu.memory_space<vmem>>, vector<1x32xf32>
    %c0_7 = arith.constant 0 : index
    %c0_8 = arith.constant 0 : index
    %4 = vector.load %arg7[%c0_7, %c0_8] : memref<16x32xbf16, #tpu.memory_space<vmem>>, vector<16x32xbf16>
    %c0_9 = arith.constant 0 : index
    %c0_10 = arith.constant 0 : index
    %5 = vector.load %arg8[%c0_9, %c0_10] : memref<1x32xf32, #tpu.memory_space<vmem>>, vector<1x32xf32>
    %c0_11 = arith.constant 0 : index
    %c0_12 = arith.constant 0 : index
    %c0_13 = arith.constant 0 : index
    %6 = vector.load %arg1[%c0_11, %c0_12, %c0_13] : memref<1x336x8xbf16, #tpu.memory_space<vmem>>, vector<1x27x8xbf16>
    %7 = vector.shape_cast %6 : vector<1x27x8xbf16> to vector<27x8xbf16>
    %c0_14 = arith.constant 0 : index
    %c81 = arith.constant 81 : index
    %c0_15 = arith.constant 0 : index
    %8 = vector.load %arg1[%c0_14, %c81, %c0_15] : memref<1x336x8xbf16, #tpu.memory_space<vmem>>, vector<1x27x8xbf16>
    %9 = vector.shape_cast %8 : vector<1x27x8xbf16> to vector<27x8xbf16>
    %c0_16 = arith.constant 0 : index
    %c1 = arith.constant 1 : index
    %c0_17 = arith.constant 0 : index
    %10 = vector.load %arg1[%c0_16, %c1, %c0_17] : memref<1x336x8xbf16, #tpu.memory_space<vmem>>, vector<1x27x8xbf16>
    %11 = vector.shape_cast %10 : vector<1x27x8xbf16> to vector<27x8xbf16>
    %c0_18 = arith.constant 0 : index
    %c162 = arith.constant 162 : index
    %c0_19 = arith.constant 0 : index
    %12 = vector.load %arg1[%c0_18, %c162, %c0_19] : memref<1x336x8xbf16, #tpu.memory_space<vmem>>, vector<1x27x8xbf16>
    %13 = vector.shape_cast %12 : vector<1x27x8xbf16> to vector<27x8xbf16>
    %c0_20 = arith.constant 0 : index
    %c243 = arith.constant 243 : index
    %c0_21 = arith.constant 0 : index
    %14 = vector.load %arg1[%c0_20, %c243, %c0_21] : memref<1x336x8xbf16, #tpu.memory_space<vmem>>, vector<1x27x8xbf16>
    %15 = vector.shape_cast %14 : vector<1x27x8xbf16> to vector<27x8xbf16>
    %c0_22 = arith.constant 0 : index
    %c163 = arith.constant 163 : index
    %c0_23 = arith.constant 0 : index
    %16 = vector.load %arg1[%c0_22, %c163, %c0_23] : memref<1x336x8xbf16, #tpu.memory_space<vmem>>, vector<1x27x8xbf16>
    %17 = vector.shape_cast %16 : vector<1x27x8xbf16> to vector<27x8xbf16>
    %c0_24 = arith.constant 0 : index
    %c9 = arith.constant 9 : index
    %c0_25 = arith.constant 0 : index
    %18 = vector.load %arg1[%c0_24, %c9, %c0_25] : memref<1x336x8xbf16, #tpu.memory_space<vmem>>, vector<1x27x8xbf16>
    %19 = vector.shape_cast %18 : vector<1x27x8xbf16> to vector<27x8xbf16>
    %c0_26 = arith.constant 0 : index
    %c90 = arith.constant 90 : index
    %c0_27 = arith.constant 0 : index
    %20 = vector.load %arg1[%c0_26, %c90, %c0_27] : memref<1x336x8xbf16, #tpu.memory_space<vmem>>, vector<1x27x8xbf16>
    %21 = vector.shape_cast %20 : vector<1x27x8xbf16> to vector<27x8xbf16>
    %c0_28 = arith.constant 0 : index
    %c10 = arith.constant 10 : index
    %c0_29 = arith.constant 0 : index
    %22 = vector.load %arg1[%c0_28, %c10, %c0_29] : memref<1x336x8xbf16, #tpu.memory_space<vmem>>, vector<1x27x8xbf16>
    %23 = vector.shape_cast %22 : vector<1x27x8xbf16> to vector<27x8xbf16>
    %24 = tpu.concatenate %7, %9, %11, %13, %15, %17, %19, %21, %23 in 1 : vector<27x8xbf16>, vector<27x8xbf16>, vector<27x8xbf16>, vector<27x8xbf16>, vector<27x8xbf16>, vector<27x8xbf16>, vector<27x8xbf16>, vector<27x8xbf16>, vector<27x8xbf16> -> vector<27x72xbf16>
    %cst = arith.constant dense<0.000000e+00> : vector<27x8xf32>
    %25 = tpu.matmul %24, %0, %cst {dimension_numbers = #tpu.dot_dimension_numbers<[1], [0], [0], [1], [0, 0, 1, 1], [], []>} : vector<27x72xbf16>, vector<72x8xbf16>, vector<27x8xf32> -> vector<27x8xf32>
    %26 = vector.broadcast %1 : vector<1x8xf32> to vector<27x8xf32>
    %27 = arith.addf %25, %26 : vector<27x8xf32>
    %cst_30 = arith.constant 0.000000e+00 : f32
    %28 = vector.broadcast %cst_30 : f32 to vector<27x8xf32>
    %29 = arith.maximumf %27, %28 : vector<27x8xf32>
    %30 = arith.truncf %29 : vector<27x8xf32> to vector<27x8xbf16>
    %cst_31 = arith.constant dense<0.000000e+00> : vector<27x32xf32>
    %31 = tpu.matmul %30, %2, %cst_31 {dimension_numbers = #tpu.dot_dimension_numbers<[1], [0], [0], [1], [0, 0, 1, 1], [], []>} : vector<27x8xbf16>, vector<8x32xbf16>, vector<27x32xf32> -> vector<27x32xf32>
    %32 = vector.broadcast %3 : vector<1x32xf32> to vector<27x32xf32>
    %33 = arith.addf %31, %32 : vector<27x32xf32>
    %c0_32 = arith.constant 0 : index
    %c0_33 = arith.constant 0 : index
    %c0_34 = arith.constant 0 : index
    %34 = vector.load %arg6[%c0_32, %c0_33, %c0_34] : memref<1x72x16xbf16, #tpu.memory_space<vmem>>, vector<1x27x16xbf16>
    %35 = vector.shape_cast %34 : vector<1x27x16xbf16> to vector<27x16xbf16>
    %cst_35 = arith.constant dense<0.000000e+00> : vector<27x32xf32>
    %36 = tpu.matmul %35, %4, %cst_35 {dimension_numbers = #tpu.dot_dimension_numbers<[1], [0], [0], [1], [0, 0, 1, 1], [], []>} : vector<27x16xbf16>, vector<16x32xbf16>, vector<27x32xf32> -> vector<27x32xf32>
    %37 = vector.broadcast %5 : vector<1x32xf32> to vector<27x32xf32>
    %38 = arith.addf %36, %37 : vector<27x32xf32>
    %39 = arith.addf %33, %38 : vector<27x32xf32>
    %cst_36 = arith.constant 0.000000e+00 : f32
    %40 = vector.broadcast %cst_36 : f32 to vector<27x32xf32>
    %41 = arith.maximumf %39, %40 : vector<27x32xf32>
    %42 = arith.truncf %41 : vector<27x32xf32> to vector<27x32xbf16>
    %c0_37 = arith.constant 0 : index
    %c0_38 = arith.constant 0 : index
    %c0_39 = arith.constant 0 : index
    %43 = vector.load %arg9[%c0_37, %c0_38, %c0_39] : memref<1x72x32xbf16, #tpu.memory_space<vmem>>, vector<1x27x32xbf16>
    %44 = vector.shape_cast %43 : vector<1x27x32xbf16> to vector<27x32xbf16>
    %45 = vector.shape_cast %42 : vector<27x32xbf16> to vector<1x27x32xbf16>
    tpu.vector_store %arg9[%c0_37, %c0_38, %c0_39], %45 {strides = array<i32>} : memref<1x72x32xbf16, #tpu.memory_space<vmem>>, vector<1x27x32xbf16>,
    %c0_40 = arith.constant 0 : index
    %c27 = arith.constant 27 : index
    %c0_41 = arith.constant 0 : index
    %46 = vector.load %arg1[%c0_40, %c27, %c0_41] : memref<1x336x8xbf16, #tpu.memory_space<vmem>>, vector<1x27x8xbf16>
    %47 = vector.shape_cast %46 : vector<1x27x8xbf16> to vector<27x8xbf16>
    %c0_42 = arith.constant 0 : index
    %c108 = arith.constant 108 : index
    %c0_43 = arith.constant 0 : index
    %48 = vector.load %arg1[%c0_42, %c108, %c0_43] : memref<1x336x8xbf16, #tpu.memory_space<vmem>>, vector<1x27x8xbf16>
    %49 = vector.shape_cast %48 : vector<1x27x8xbf16> to vector<27x8xbf16>
    %c0_44 = arith.constant 0 : index
    %c28 = arith.constant 28 : index
    %c0_45 = arith.constant 0 : index
    %50 = vector.load %arg1[%c0_44, %c28, %c0_45] : memref<1x336x8xbf16, #tpu.memory_space<vmem>>, vector<1x27x8xbf16>
    %51 = vector.shape_cast %50 : vector<1x27x8xbf16> to vector<27x8xbf16>
    %c0_46 = arith.constant 0 : index
    %c189 = arith.constant 189 : index
    %c0_47 = arith.constant 0 : index
    %52 = vector.load %arg1[%c0_46, %c189, %c0_47] : memref<1x336x8xbf16, #tpu.memory_space<vmem>>, vector<1x27x8xbf16>
    %53 = vector.shape_cast %52 : vector<1x27x8xbf16> to vector<27x8xbf16>
    %c0_48 = arith.constant 0 : index
    %c270 = arith.constant 270 : index
    %c0_49 = arith.constant 0 : index
    %54 = vector.load %arg1[%c0_48, %c270, %c0_49] : memref<1x336x8xbf16, #tpu.memory_space<vmem>>, vector<1x27x8xbf16>
    %55 = vector.shape_cast %54 : vector<1x27x8xbf16> to vector<27x8xbf16>
    %c0_50 = arith.constant 0 : index
    %c190 = arith.constant 190 : index
    %c0_51 = arith.constant 0 : index
    %56 = vector.load %arg1[%c0_50, %c190, %c0_51] : memref<1x336x8xbf16, #tpu.memory_space<vmem>>, vector<1x27x8xbf16>
    %57 = vector.shape_cast %56 : vector<1x27x8xbf16> to vector<27x8xbf16>
    %c0_52 = arith.constant 0 : index
    %c36 = arith.constant 36 : index
    %c0_53 = arith.constant 0 : index
    %58 = vector.load %arg1[%c0_52, %c36, %c0_53] : memref<1x336x8xbf16, #tpu.memory_space<vmem>>, vector<1x27x8xbf16>
    %59 = vector.shape_cast %58 : vector<1x27x8xbf16> to vector<27x8xbf16>
    %c0_54 = arith.constant 0 : index
    %c117 = arith.constant 117 : index
    %c0_55 = arith.constant 0 : index
    %60 = vector.load %arg1[%c0_54, %c117, %c0_55] : memref<1x336x8xbf16, #tpu.memory_space<vmem>>, vector<1x27x8xbf16>
    %61 = vector.shape_cast %60 : vector<1x27x8xbf16> to vector<27x8xbf16>
    %c0_56 = arith.constant 0 : index
    %c37 = arith.constant 37 : index
    %c0_57 = arith.constant 0 : index
    %62 = vector.load %arg1[%c0_56, %c37, %c0_57] : memref<1x336x8xbf16, #tpu.memory_space<vmem>>, vector<1x27x8xbf16>
    %63 = vector.shape_cast %62 : vector<1x27x8xbf16> to vector<27x8xbf16>
    %64 = tpu.concatenate %47, %49, %51, %53, %55, %57, %59, %61, %63 in 1 : vector<27x8xbf16>, vector<27x8xbf16>, vector<27x8xbf16>, vector<27x8xbf16>, vector<27x8xbf16>, vector<27x8xbf16>, vector<27x8xbf16>, vector<27x8xbf16>, vector<27x8xbf16> -> vector<27x72xbf16>
    %cst_58 = arith.constant dense<0.000000e+00> : vector<27x8xf32>
    %65 = tpu.matmul %64, %0, %cst_58 {dimension_numbers = #tpu.dot_dimension_numbers<[1], [0], [0], [1], [0, 0, 1, 1], [], []>} : vector<27x72xbf16>, vector<72x8xbf16>, vector<27x8xf32> -> vector<27x8xf32>
    %66 = vector.broadcast %1 : vector<1x8xf32> to vector<27x8xf32>
    %67 = arith.addf %65, %66 : vector<27x8xf32>
    %cst_59 = arith.constant 0.000000e+00 : f32
    %68 = vector.broadcast %cst_59 : f32 to vector<27x8xf32>
    %69 = arith.maximumf %67, %68 : vector<27x8xf32>
    %70 = arith.truncf %69 : vector<27x8xf32> to vector<27x8xbf16>
    %cst_60 = arith.constant dense<0.000000e+00> : vector<27x32xf32>
    %71 = tpu.matmul %70, %2, %cst_60 {dimension_numbers = #tpu.dot_dimension_numbers<[1], [0], [0], [1], [0, 0, 1, 1], [], []>} : vector<27x8xbf16>, vector<8x32xbf16>, vector<27x32xf32> -> vector<27x32xf32>
    %72 = vector.broadcast %3 : vector<1x32xf32> to vector<27x32xf32>
    %73 = arith.addf %71, %72 : vector<27x32xf32>
    %c0_61 = arith.constant 0 : index
    %c27_62 = arith.constant 27 : index
    %c0_63 = arith.constant 0 : index
    %74 = vector.load %arg6[%c0_61, %c27_62, %c0_63] : memref<1x72x16xbf16, #tpu.memory_space<vmem>>, vector<1x27x16xbf16>
    %75 = vector.shape_cast %74 : vector<1x27x16xbf16> to vector<27x16xbf16>
    %cst_64 = arith.constant dense<0.000000e+00> : vector<27x32xf32>
    %76 = tpu.matmul %75, %4, %cst_64 {dimension_numbers = #tpu.dot_dimension_numbers<[1], [0], [0], [1], [0, 0, 1, 1], [], []>} : vector<27x16xbf16>, vector<16x32xbf16>, vector<27x32xf32> -> vector<27x32xf32>
    %77 = vector.broadcast %5 : vector<1x32xf32> to vector<27x32xf32>
    %78 = arith.addf %76, %77 : vector<27x32xf32>
    %79 = arith.addf %73, %78 : vector<27x32xf32>
    %cst_65 = arith.constant 0.000000e+00 : f32
    %80 = vector.broadcast %cst_65 : f32 to vector<27x32xf32>
    %81 = arith.maximumf %79, %80 : vector<27x32xf32>
    %82 = arith.truncf %81 : vector<27x32xf32> to vector<27x32xbf16>
    %c0_66 = arith.constant 0 : index
    %c27_67 = arith.constant 27 : index
    %c0_68 = arith.constant 0 : index
    %83 = vector.load %arg9[%c0_66, %c27_67, %c0_68] : memref<1x72x32xbf16, #tpu.memory_space<vmem>>, vector<1x27x32xbf16>
    %84 = vector.shape_cast %83 : vector<1x27x32xbf16> to vector<27x32xbf16>
    %85 = vector.shape_cast %82 : vector<27x32xbf16> to vector<1x27x32xbf16>
    tpu.vector_store %arg9[%c0_66, %c27_67, %c0_68], %85 {strides = array<i32>} : memref<1x72x32xbf16, #tpu.memory_space<vmem>>, vector<1x27x32xbf16>,
    %c0_69 = arith.constant 0 : index
    %c54 = arith.constant 54 : index
    %c0_70 = arith.constant 0 : index
    %86 = vector.load %arg1[%c0_69, %c54, %c0_70] : memref<1x336x8xbf16, #tpu.memory_space<vmem>>, vector<1x18x8xbf16>
    %87 = vector.shape_cast %86 : vector<1x18x8xbf16> to vector<18x8xbf16>
    %c0_71 = arith.constant 0 : index
    %c135 = arith.constant 135 : index
    %c0_72 = arith.constant 0 : index
    %88 = vector.load %arg1[%c0_71, %c135, %c0_72] : memref<1x336x8xbf16, #tpu.memory_space<vmem>>, vector<1x18x8xbf16>
    %89 = vector.shape_cast %88 : vector<1x18x8xbf16> to vector<18x8xbf16>
    %c0_73 = arith.constant 0 : index
    %c55 = arith.constant 55 : index
    %c0_74 = arith.constant 0 : index
    %90 = vector.load %arg1[%c0_73, %c55, %c0_74] : memref<1x336x8xbf16, #tpu.memory_space<vmem>>, vector<1x18x8xbf16>
    %91 = vector.shape_cast %90 : vector<1x18x8xbf16> to vector<18x8xbf16>
    %c0_75 = arith.constant 0 : index
    %c216 = arith.constant 216 : index
    %c0_76 = arith.constant 0 : index
    %92 = vector.load %arg1[%c0_75, %c216, %c0_76] : memref<1x336x8xbf16, #tpu.memory_space<vmem>>, vector<1x18x8xbf16>
    %93 = vector.shape_cast %92 : vector<1x18x8xbf16> to vector<18x8xbf16>
    %c0_77 = arith.constant 0 : index
    %c297 = arith.constant 297 : index
    %c0_78 = arith.constant 0 : index
    %94 = vector.load %arg1[%c0_77, %c297, %c0_78] : memref<1x336x8xbf16, #tpu.memory_space<vmem>>, vector<1x18x8xbf16>
    %95 = vector.shape_cast %94 : vector<1x18x8xbf16> to vector<18x8xbf16>
    %c0_79 = arith.constant 0 : index
    %c217 = arith.constant 217 : index
    %c0_80 = arith.constant 0 : index
    %96 = vector.load %arg1[%c0_79, %c217, %c0_80] : memref<1x336x8xbf16, #tpu.memory_space<vmem>>, vector<1x18x8xbf16>
    %97 = vector.shape_cast %96 : vector<1x18x8xbf16> to vector<18x8xbf16>
    %c0_81 = arith.constant 0 : index
    %c63 = arith.constant 63 : index
    %c0_82 = arith.constant 0 : index
    %98 = vector.load %arg1[%c0_81, %c63, %c0_82] : memref<1x336x8xbf16, #tpu.memory_space<vmem>>, vector<1x18x8xbf16>
    %99 = vector.shape_cast %98 : vector<1x18x8xbf16> to vector<18x8xbf16>
    %c0_83 = arith.constant 0 : index
    %c144 = arith.constant 144 : index
    %c0_84 = arith.constant 0 : index
    %100 = vector.load %arg1[%c0_83, %c144, %c0_84] : memref<1x336x8xbf16, #tpu.memory_space<vmem>>, vector<1x18x8xbf16>
    %101 = vector.shape_cast %100 : vector<1x18x8xbf16> to vector<18x8xbf16>
    %c0_85 = arith.constant 0 : index
    %c64 = arith.constant 64 : index
    %c0_86 = arith.constant 0 : index
    %102 = vector.load %arg1[%c0_85, %c64, %c0_86] : memref<1x336x8xbf16, #tpu.memory_space<vmem>>, vector<1x18x8xbf16>
    %103 = vector.shape_cast %102 : vector<1x18x8xbf16> to vector<18x8xbf16>
    %104 = tpu.concatenate %87, %89, %91, %93, %95, %97, %99, %101, %103 in 1 : vector<18x8xbf16>, vector<18x8xbf16>, vector<18x8xbf16>, vector<18x8xbf16>, vector<18x8xbf16>, vector<18x8xbf16>, vector<18x8xbf16>, vector<18x8xbf16>, vector<18x8xbf16> -> vector<18x72xbf16>
    %cst_87 = arith.constant dense<0.000000e+00> : vector<18x8xf32>
    %105 = tpu.matmul %104, %0, %cst_87 {dimension_numbers = #tpu.dot_dimension_numbers<[1], [0], [0], [1], [0, 0, 1, 1], [], []>} : vector<18x72xbf16>, vector<72x8xbf16>, vector<18x8xf32> -> vector<18x8xf32>
    %106 = vector.broadcast %1 : vector<1x8xf32> to vector<18x8xf32>
    %107 = arith.addf %105, %106 : vector<18x8xf32>
    %cst_88 = arith.constant 0.000000e+00 : f32
    %108 = vector.broadcast %cst_88 : f32 to vector<18x8xf32>
    %109 = arith.maximumf %107, %108 : vector<18x8xf32>
    %110 = arith.truncf %109 : vector<18x8xf32> to vector<18x8xbf16>
    %cst_89 = arith.constant dense<0.000000e+00> : vector<18x32xf32>
    %111 = tpu.matmul %110, %2, %cst_89 {dimension_numbers = #tpu.dot_dimension_numbers<[1], [0], [0], [1], [0, 0, 1, 1], [], []>} : vector<18x8xbf16>, vector<8x32xbf16>, vector<18x32xf32> -> vector<18x32xf32>
    %112 = vector.broadcast %3 : vector<1x32xf32> to vector<18x32xf32>
    %113 = arith.addf %111, %112 : vector<18x32xf32>
    %c0_90 = arith.constant 0 : index
    %c54_91 = arith.constant 54 : index
    %c0_92 = arith.constant 0 : index
    %114 = vector.load %arg6[%c0_90, %c54_91, %c0_92] : memref<1x72x16xbf16, #tpu.memory_space<vmem>>, vector<1x18x16xbf16>
    %115 = vector.shape_cast %114 : vector<1x18x16xbf16> to vector<18x16xbf16>
    %cst_93 = arith.constant dense<0.000000e+00> : vector<18x32xf32>
    %116 = tpu.matmul %115, %4, %cst_93 {dimension_numbers = #tpu.dot_dimension_numbers<[1], [0], [0], [1], [0, 0, 1, 1], [], []>} : vector<18x16xbf16>, vector<16x32xbf16>, vector<18x32xf32> -> vector<18x32xf32>
    %117 = vector.broadcast %5 : vector<1x32xf32> to vector<18x32xf32>
    %118 = arith.addf %116, %117 : vector<18x32xf32>
    %119 = arith.addf %113, %118 : vector<18x32xf32>
    %cst_94 = arith.constant 0.000000e+00 : f32
    %120 = vector.broadcast %cst_94 : f32 to vector<18x32xf32>
    %121 = arith.maximumf %119, %120 : vector<18x32xf32>
    %122 = arith.truncf %121 : vector<18x32xf32> to vector<18x32xbf16>
    %c0_95 = arith.constant 0 : index
    %c54_96 = arith.constant 54 : index
    %c0_97 = arith.constant 0 : index
    %123 = vector.load %arg9[%c0_95, %c54_96, %c0_97] : memref<1x72x32xbf16, #tpu.memory_space<vmem>>, vector<1x18x32xbf16>
    %124 = vector.shape_cast %123 : vector<1x18x32xbf16> to vector<18x32xbf16>
    %125 = vector.shape_cast %122 : vector<18x32xbf16> to vector<1x18x32xbf16>
    tpu.vector_store %arg9[%c0_95, %c54_96, %c0_97], %125 {strides = array<i32>} : memref<1x72x32xbf16, #tpu.memory_space<vmem>>, vector<1x18x32xbf16>,
    return
  }
  func.func @transform_0(%arg0: i32) -> (i32, i32, i32) {
    %c0_i32 = arith.constant 0 : i32
    %c0_i32_0 = arith.constant 0 : i32
    %c0_i32_1 = arith.constant 0 : i32
    return %arg0, %c0_i32, %c0_i32_0 : i32, i32, i32
  }
  func.func @transform_1(%arg0: i32) -> (i32, i32) {
    %c0_i32 = arith.constant 0 : i32
    %c0_i32_0 = arith.constant 0 : i32
    %c0_i32_1 = arith.constant 0 : i32
    return %c0_i32, %c0_i32_0 : i32, i32
  }
  func.func @transform_2(%arg0: i32) -> (i32, i32) {
    %c0_i32 = arith.constant 0 : i32
    %c0_i32_0 = arith.constant 0 : i32
    %c0_i32_1 = arith.constant 0 : i32
    return %c0_i32, %c0_i32_0 : i32, i32
  }
  func.func @transform_3(%arg0: i32) -> (i32, i32) {
    %c0_i32 = arith.constant 0 : i32
    %c0_i32_0 = arith.constant 0 : i32
    %c0_i32_1 = arith.constant 0 : i32
    return %c0_i32, %c0_i32_0 : i32, i32
  }
  func.func @transform_4(%arg0: i32) -> (i32, i32) {
    %c0_i32 = arith.constant 0 : i32
    %c0_i32_0 = arith.constant 0 : i32
    %c0_i32_1 = arith.constant 0 : i32
    return %c0_i32, %c0_i32_0 : i32, i32
  }
  func.func @transform_5(%arg0: i32) -> (i32, i32, i32) {
    %c0_i32 = arith.constant 0 : i32
    %c0_i32_0 = arith.constant 0 : i32
    %c0_i32_1 = arith.constant 0 : i32
    return %arg0, %c0_i32, %c0_i32_0 : i32, i32, i32
  }
  func.func @transform_6(%arg0: i32) -> (i32, i32) {
    %c0_i32 = arith.constant 0 : i32
    %c0_i32_0 = arith.constant 0 : i32
    %c0_i32_1 = arith.constant 0 : i32
    return %c0_i32, %c0_i32_0 : i32, i32
  }
  func.func @transform_7(%arg0: i32) -> (i32, i32) {
    %c0_i32 = arith.constant 0 : i32
    %c0_i32_0 = arith.constant 0 : i32
    %c0_i32_1 = arith.constant 0 : i32
    return %c0_i32, %c0_i32_0 : i32, i32
  }
  func.func @transform_8(%arg0: i32) -> (i32, i32, i32) {
    %c0_i32 = arith.constant 0 : i32
    %c0_i32_0 = arith.constant 0 : i32
    %c0_i32_1 = arith.constant 0 : i32
    return %arg0, %c0_i32, %c0_i32_0 : i32, i32, i32
  }
}

</mosaic_0001>

<bundles_post_ra>
// kernel: bottleneck_forward.2
= control target key start
LH: loop header
LB: loop body
LE: loop exit
PB: predicated region body
PF: predicated region fallthrough
CT: control target
= control target key end

     0   :  { %vm251_vm0 = vcmask 130048   ;;  %vm645_vm1 = vcmask 60416   ;;  %s1391_s1 = inlined_call_operand.vmem [shape: bf16[16,8], index: 1, kind: input, shape index: {}]   ;;  %s1392_s0 = inlined_call_operand.vmem [shape: bf16[512,16], index: 0, kind: input, shape index: {}]   ;;  %s1393_s2 = inlined_call_operand.vmem [shape: f32[1,8], index: 2, kind: input, shape index: {}]   ;;  %s1394_s3 = inlined_call_operand.vmem [shape: bf16[512,8], index: 3, kind: output, shape index: {}]  }
   0x1   :  { %v910_v0 = vld [vmem:[%s1391_s1] sm:$0xff]  ;;  %v879_v5 = vld [vmem:[%s1392_s0 + $0x8] sm:$0xff]  ;;  %v880_v9 = vld [vmem:[%s1392_s0 + $0x10] sm:$0xff] }
   0x2   :  { %v878_v1 = vld [vmem:[%s1392_s0] sm:$0xff]  ;;  %355 = vmatpush.bf16.msra.mxu0 %v910_v0  ;;  %911 = vmatpush.bf16.msra.mxu1 %v910_v0  ;;  %v887_v6 = vld [vmem:[%s1392_s0 + $0x48] sm:$0xff]  ;;  %v888_v10 = vld [vmem:[%s1392_s0 + $0x50] sm:$0xff] }
   0x3   :  { %v886_v2 = vld [vmem:[%s1392_s0 + $0x40] sm:$0xff]  ;;  %912 = vmatpush.bf16.msra.mxu2 %v910_v0  ;;  %913 = vmatpush.bf16.msra.mxu3 %v910_v0  ;;  %v895_v7 = vld [vmem:[%s1392_s0 + $0x88] sm:$0xff]  ;;  %v896_v11 = vld [vmem:[%s1392_s0 + $0x90] sm:$0xff] }
   0x4   :  { %v894_v3 = vld [vmem:[%s1392_s0 + $0x80] sm:$0xff]  ;;  %v903_v8 = vld [vmem:[%s1392_s0 + $0xc8] sm:$0xff]  ;;  %v904_v12 = vld [vmem:[%s1392_s0 + $0xd0] sm:$0xff] }
   0x5   :  { %v902_v4 = vld [vmem:[%s1392_s0 + $0xc0] sm:$0xff]  ;;  %846 = vmatmul.msk.bf16.vlgmr.msra.gmra.mxu0 %vm251_vm0, %v878_v1  ;;  %854 = vmatmul.msk.bf16.vlgmr.msra.gmra.mxu1 %vm251_vm0, %v886_v2  ;;  %v881_v13 = vld [vmem:[%s1392_s0 + $0x18] sm:$0xff]  ;;  %v883_v21 = vld [vmem:[%s1392_s0 + $0x28] sm:$0xff] }
   0x6   :  { %862 = vmatmul.msk.bf16.vlgmr.msra.gmra.mxu2 %vm251_vm0, %v894_v3  ;;  %870 = vmatmul.msk.bf16.vlgmr.msra.gmra.mxu3 %vm251_vm0, %v902_v4  ;;  %v889_v14 = vld [vmem:[%s1392_s0 + $0x58] sm:$0xff]  ;;  %v882_v17 = vld [vmem:[%s1392_s0 + $0x20] sm:$0xff]  ;;  %v891_v22 = vld [vmem:[%s1392_s0 + $0x68] sm:$0xff] }
   0x7   :  { %v897_v15 = vld [vmem:[%s1392_s0 + $0x98] sm:$0xff]  ;;  %v890_v18 = vld [vmem:[%s1392_s0 + $0x60] sm:$0xff]  ;;  %v899_v23 = vld [vmem:[%s1392_s0 + $0xa8] sm:$0xff] }
   0x8   :  { %v905_v16 = vld [vmem:[%s1392_s0 + $0xd8] sm:$0xff]  ;;  %v898_v19 = vld [vmem:[%s1392_s0 + $0xa0] sm:$0xff]  ;;  %v907_v24 = vld [vmem:[%s1392_s0 + $0xe8] sm:$0xff] }
   0x9   :  { %v906_v20 = vld [vmem:[%s1392_s0 + $0xe0] sm:$0xff]  ;;  %v884_v25 = vld [vmem:[%s1392_s0 + $0x30] sm:$0xff]  ;;  %v885_v29 = vld [vmem:[%s1392_s0 + $0x38] sm:$0xff] }
   0xa   :  { %v892_v26 = vld [vmem:[%s1392_s0 + $0x70] sm:$0xff]  ;;  %v893_v30 = vld [vmem:[%s1392_s0 + $0x78] sm:$0xff]  ;;  %v1069_v33 = vld [vmem:[%s1393_s2] ss:$0 sm:$0xff] }
   0xb   :  { %v900_v27 = vld [vmem:[%s1392_s0 + $0xb0] sm:$0xff]  ;;  %v901_v31 = vld [vmem:[%s1392_s0 + $0xb8] sm:$0xff] }
   0xc   :  { %v908_v28 = vld [vmem:[%s1392_s0 + $0xf0] sm:$0xff]  ;;  %v909_v32 = vld [vmem:[%s1392_s0 + $0xf8] sm:$0xff] }
  0x15   :  { %847 = vmatmul.msk.bf16.gmra.mxu0 %vm251_vm0, %v879_v5  ;;  %855 = vmatmul.msk.bf16.gmra.mxu1 %vm251_vm0, %v887_v6 }
  0x16   :  { %863 = vmatmul.msk.bf16.gmra.mxu2 %vm251_vm0, %v895_v7  ;;  %871 = vmatmul.msk.bf16.gmra.mxu3 %vm251_vm0, %v903_v8 }
  0x25   :  { %848 = vmatmul.msk.bf16.gmra.mxu0 %vm251_vm0, %v880_v9  ;;  %856 = vmatmul.msk.bf16.gmra.mxu1 %vm251_vm0, %v888_v10 }
  0x26   :  { %864 = vmatmul.msk.bf16.gmra.mxu2 %vm251_vm0, %v896_v11  ;;  %872 = vmatmul.msk.bf16.gmra.mxu3 %vm251_vm0, %v904_v12 }
  0x35   :  { %849 = vmatmul.msk.bf16.gmra.mxu0 %vm251_vm0, %v881_v13  ;;  %857 = vmatmul.msk.bf16.gmra.mxu1 %vm251_vm0, %v889_v14 }
  0x36   :  { %865 = vmatmul.msk.bf16.gmra.mxu2 %vm251_vm0, %v897_v15  ;;  %873 = vmatmul.msk.bf16.gmra.mxu3 %vm251_vm0, %v905_v16 }
  0x45   :  { %850 = vmatmul.msk.bf16.gmra.mxu0 %vm251_vm0, %v882_v17  ;;  %858 = vmatmul.msk.bf16.gmra.mxu1 %vm251_vm0, %v890_v18 }
  0x46   :  { %866 = vmatmul.msk.bf16.gmra.mxu2 %vm251_vm0, %v898_v19  ;;  %874 = vmatmul.msk.bf16.gmra.mxu3 %vm251_vm0, %v906_v20 }
  0x55   :  { %851 = vmatmul.msk.bf16.gmra.mxu0 %vm251_vm0, %v883_v21  ;;  %859 = vmatmul.msk.bf16.gmra.mxu1 %vm251_vm0, %v891_v22 }
  0x56   :  { %867 = vmatmul.msk.bf16.gmra.mxu2 %vm251_vm0, %v899_v23  ;;  %875 = vmatmul.msk.bf16.gmra.mxu3 %vm251_vm0, %v907_v24 }
  0x65   :  { %852 = vmatmul.msk.bf16.gmra.mxu0 %vm251_vm0, %v884_v25  ;;  %860 = vmatmul.msk.bf16.gmra.mxu1 %vm251_vm0, %v892_v26 }
  0x66   :  { %868 = vmatmul.msk.bf16.gmra.mxu2 %vm251_vm0, %v900_v27  ;;  %876 = vmatmul.msk.bf16.gmra.mxu3 %vm251_vm0, %v908_v28 }
  0x75   :  { %853 = vmatmul.msk.bf16.gmra.mxu0 %vm251_vm0, %v885_v29  ;;  %861 = vmatmul.msk.bf16.gmra.mxu1 %vm251_vm0, %v893_v30 }
  0x76   :  { %869 = vmatmul.msk.bf16.gmra.mxu2 %vm251_vm0, %v901_v31  ;;  %877 = vmatmul.msk.bf16.gmra.mxu3 %vm251_vm0, %v909_v32 }
  0x82   :  { %v357_v34 = vpop.f32.mrf.mxu0  ;;  %v397_v35 = vpop.f32.mrf.mxu1 }
  0x83   :  { %v358_v36 = vadd.f32 %v1069_v33, %v357_v34  ;;  %v398_v37 = vadd.f32 %v1069_v33, %v397_v35 }
  0x85   :  { %v517_v38 = vmax.f32 %v358_v36, 0.0  ;;  %v533_v39 = vmax.f32 %v398_v37, 0.0 }
  0x87   :  { %v581_v40 = vpack.c.bf16 %v517_v38, %v517_v38  ;;  %v597_v41 = vpack.c.bf16 %v533_v39, %v533_v39 }
  0x89   :  { %646 = vst.msk [vmem:[%s1394_s3] sm:$0xf] %vm645_vm1, %v581_v40  ;;  %v437_v42 = vpop.f32.mrf.mxu2  ;;  %v477_v43 = vpop.f32.mrf.mxu3 }
  0x8a   :  { %662 = vst.msk [vmem:[%s1394_s3 + $0x40] sm:$0xf] %vm645_vm1, %v597_v41  ;;  %v438_v44 = vadd.f32 %v1069_v33, %v437_v42  ;;  %v478_v45 = vadd.f32 %v1069_v33, %v477_v43  ;;  %v359_v46 = vpop.f32.mrf.mxu0  ;;  %v399_v47 = vpop.f32.mrf.mxu1 }
  0x8b   :  { %v360_v48 = vadd.f32 %v1069_v33, %v359_v46  ;;  %v400_v49 = vadd.f32 %v1069_v33, %v399_v47 }
  0x8c   :  { %v549_v50 = vmax.f32 %v438_v44, 0.0  ;;  %v565_v51 = vmax.f32 %v478_v45, 0.0 }
  0x8d   :  { %v518_v52 = vmax.f32 %v360_v48, 0.0  ;;  %v534_v53 = vmax.f32 %v400_v49, 0.0 }
  0x8e   :  { %v613_v54 = vpack.c.bf16 %v549_v50, %v549_v50  ;;  %v629_v55 = vpack.c.bf16 %v565_v51, %v565_v51 }
  0x8f   :  { %v582_v56 = vpack.c.bf16 %v518_v52, %v518_v52  ;;  %v598_v57 = vpack.c.bf16 %v534_v53, %v534_v53 }
  0x90   :  { %678 = vst.msk [vmem:[%s1394_s3 + $0x80] sm:$0xf] %vm645_vm1, %v613_v54 }
  0x91   :  { %694 = vst.msk [vmem:[%s1394_s3 + $0xc0] sm:$0xf] %vm645_vm1, %v629_v55  ;;  %v439_v58 = vpop.f32.mrf.mxu2  ;;  %v479_v59 = vpop.f32.mrf.mxu3 }
  0x92   :  { %647 = vst.msk [vmem:[%s1394_s3 + $0x4] sm:$0xf] %vm645_vm1, %v582_v56  ;;  %v440_v60 = vadd.f32 %v1069_v33, %v439_v58  ;;  %v480_v61 = vadd.f32 %v1069_v33, %v479_v59  ;;  %v362_v62 = vpop.f32.mrf.mxu0  ;;  %v402_v63 = vpop.f32.mrf.mxu1 }
  0x93   :  { %663 = vst.msk [vmem:[%s1394_s3 + $0x44] sm:$0xf] %vm645_vm1, %v598_v57  ;;  %v363_v0 = vadd.f32 %v1069_v33, %v362_v62  ;;  %v403_v1 = vadd.f32 %v1069_v33, %v402_v63 }
  0x94   :  { %v550_v2 = vmax.f32 %v440_v60, 0.0  ;;  %v566_v3 = vmax.f32 %v480_v61, 0.0 }
  0x95   :  { %v519_v4 = vmax.f32 %v363_v0, 0.0  ;;  %v535_v5 = vmax.f32 %v403_v1, 0.0 }
  0x96   :  { %v614_v6 = vpack.c.bf16 %v550_v2, %v550_v2  ;;  %v630_v7 = vpack.c.bf16 %v566_v3, %v566_v3 }
  0x97   :  { %v583_v8 = vpack.c.bf16 %v519_v4, %v519_v4  ;;  %v599_v9 = vpack.c.bf16 %v535_v5, %v535_v5 }
  0x98   :  { %679 = vst.msk [vmem:[%s1394_s3 + $0x84] sm:$0xf] %vm645_vm1, %v614_v6 }
  0x99   :  { %695 = vst.msk [vmem:[%s1394_s3 + $0xc4] sm:$0xf] %vm645_vm1, %v630_v7  ;;  %v442_v10 = vpop.f32.mrf.mxu2  ;;  %v482_v11 = vpop.f32.mrf.mxu3 }
  0x9a   :  { %648 = vst.msk [vmem:[%s1394_s3 + $0x8] sm:$0xf] %vm645_vm1, %v583_v8  ;;  %v443_v12 = vadd.f32 %v1069_v33, %v442_v10  ;;  %v483_v13 = vadd.f32 %v1069_v33, %v482_v11  ;;  %v364_v14 = vpop.f32.mrf.mxu0  ;;  %v404_v15 = vpop.f32.mrf.mxu1 }
  0x9b   :  { %664 = vst.msk [vmem:[%s1394_s3 + $0x48] sm:$0xf] %vm645_vm1, %v599_v9  ;;  %v365_v16 = vadd.f32 %v1069_v33, %v364_v14  ;;  %v405_v17 = vadd.f32 %v1069_v33, %v404_v15 }
  0x9c   :  { %v551_v18 = vmax.f32 %v443_v12, 0.0  ;;  %v567_v19 = vmax.f32 %v483_v13, 0.0 }
  0x9d   :  { %v520_v20 = vmax.f32 %v365_v16, 0.0  ;;  %v536_v21 = vmax.f32 %v405_v17, 0.0 }
  0x9e   :  { %v615_v22 = vpack.c.bf16 %v551_v18, %v551_v18  ;;  %v631_v23 = vpack.c.bf16 %v567_v19, %v567_v19 }
  0x9f   :  { %v584_v24 = vpack.c.bf16 %v520_v20, %v520_v20  ;;  %v600_v25 = vpack.c.bf16 %v536_v21, %v536_v21 }
  0xa0   :  { %680 = vst.msk [vmem:[%s1394_s3 + $0x88] sm:$0xf] %vm645_vm1, %v615_v22 }
  0xa1   :  { %696 = vst.msk [vmem:[%s1394_s3 + $0xc8] sm:$0xf] %vm645_vm1, %v631_v23  ;;  %v444_v26 = vpop.f32.mrf.mxu2  ;;  %v484_v27 = vpop.f32.mrf.mxu3 }
  0xa2   :  { %649 = vst.msk [vmem:[%s1394_s3 + $0xc] sm:$0xf] %vm645_vm1, %v584_v24  ;;  %v445_v28 = vadd.f32 %v1069_v33, %v444_v26  ;;  %v485_v29 = vadd.f32 %v1069_v33, %v484_v27  ;;  %v367_v30 = vpop.f32.mrf.mxu0  ;;  %v407_v31 = vpop.f32.mrf.mxu1 }
  0xa3   :  { %665 = vst.msk [vmem:[%s1394_s3 + $0x4c] sm:$0xf] %vm645_vm1, %v600_v25  ;;  %v368_v32 = vadd.f32 %v1069_v33, %v367_v30  ;;  %v408_v34 = vadd.f32 %v1069_v33, %v407_v31 }
  0xa4   :  { %v552_v35 = vmax.f32 %v445_v28, 0.0  ;;  %v568_v36 = vmax.f32 %v485_v29, 0.0 }
  0xa5   :  { %v521_v37 = vmax.f32 %v368_v32, 0.0  ;;  %v537_v38 = vmax.f32 %v408_v34, 0.0 }
  0xa6   :  { %v616_v39 = vpack.c.bf16 %v552_v35, %v552_v35  ;;  %v632_v40 = vpack.c.bf16 %v568_v36, %v568_v36 }
  0xa7   :  { %v585_v41 = vpack.c.bf16 %v521_v37, %v521_v37  ;;  %v601_v42 = vpack.c.bf16 %v537_v38, %v537_v38 }
  0xa8   :  { %681 = vst.msk [vmem:[%s1394_s3 + $0x8c] sm:$0xf] %vm645_vm1, %v616_v39 }
  0xa9   :  { %697 = vst.msk [vmem:[%s1394_s3 + $0xcc] sm:$0xf] %vm645_vm1, %v632_v40  ;;  %v447_v43 = vpop.f32.mrf.mxu2  ;;  %v487_v44 = vpop.f32.mrf.mxu3 }
  0xaa   :  { %650 = vst.msk [vmem:[%s1394_s3 + $0x10] sm:$0xf] %vm645_vm1, %v585_v41  ;;  %v448_v45 = vadd.f32 %v1069_v33, %v447_v43  ;;  %v488_v46 = vadd.f32 %v1069_v33, %v487_v44  ;;  %v369_v47 = vpop.f32.mrf.mxu0  ;;  %v409_v48 = vpop.f32.mrf.mxu1 }
  0xab   :  { %666 = vst.msk [vmem:[%s1394_s3 + $0x50] sm:$0xf] %vm645_vm1, %v601_v42  ;;  %v370_v49 = vadd.f32 %v1069_v33, %v369_v47  ;;  %v410_v50 = vadd.f32 %v1069_v33, %v409_v48 }
  0xac   :  { %v553_v51 = vmax.f32 %v448_v45, 0.0  ;;  %v569_v52 = vmax.f32 %v488_v46, 0.0 }
  0xad   :  { %v522_v53 = vmax.f32 %v370_v49, 0.0  ;;  %v538_v54 = vmax.f32 %v410_v50, 0.0 }
  0xae   :  { %v617_v55 = vpack.c.bf16 %v553_v51, %v553_v51  ;;  %v633_v56 = vpack.c.bf16 %v569_v52, %v569_v52 }
  0xaf   :  { %v586_v57 = vpack.c.bf16 %v522_v53, %v522_v53  ;;  %v602_v58 = vpack.c.bf16 %v538_v54, %v538_v54 }
  0xb0   :  { %682 = vst.msk [vmem:[%s1394_s3 + $0x90] sm:$0xf] %vm645_vm1, %v617_v55 }
  0xb1   :  { %698 = vst.msk [vmem:[%s1394_s3 + $0xd0] sm:$0xf] %vm645_vm1, %v633_v56  ;;  %v449_v59 = vpop.f32.mrf.mxu2  ;;  %v489_v60 = vpop.f32.mrf.mxu3 }
  0xb2   :  { %651 = vst.msk [vmem:[%s1394_s3 + $0x14] sm:$0xf] %vm645_vm1, %v586_v57  ;;  %v450_v61 = vadd.f32 %v1069_v33, %v449_v59  ;;  %v490_v62 = vadd.f32 %v1069_v33, %v489_v60  ;;  %v372_v63 = vpop.f32.mrf.mxu0  ;;  %v412_v0 = vpop.f32.mrf.mxu1 }
  0xb3   :  { %667 = vst.msk [vmem:[%s1394_s3 + $0x54] sm:$0xf] %vm645_vm1, %v602_v58  ;;  %v373_v1 = vadd.f32 %v1069_v33, %v372_v63  ;;  %v413_v2 = vadd.f32 %v1069_v33, %v412_v0 }
  0xb4   :  { %v554_v3 = vmax.f32 %v450_v61, 0.0  ;;  %v570_v4 = vmax.f32 %v490_v62, 0.0 }
  0xb5   :  { %v523_v5 = vmax.f32 %v373_v1, 0.0  ;;  %v539_v6 = vmax.f32 %v413_v2, 0.0 }
  0xb6   :  { %v618_v7 = vpack.c.bf16 %v554_v3, %v554_v3  ;;  %v634_v8 = vpack.c.bf16 %v570_v4, %v570_v4 }
  0xb7   :  { %v587_v9 = vpack.c.bf16 %v523_v5, %v523_v5  ;;  %v603_v10 = vpack.c.bf16 %v539_v6, %v539_v6 }
  0xb8   :  { %683 = vst.msk [vmem:[%s1394_s3 + $0x94] sm:$0xf] %vm645_vm1, %v618_v7 }
  0xb9   :  { %699 = vst.msk [vmem:[%s1394_s3 + $0xd4] sm:$0xf] %vm645_vm1, %v634_v8  ;;  %v452_v11 = vpop.f32.mrf.mxu2  ;;  %v492_v12 = vpop.f32.mrf.mxu3 }
  0xba   :  { %652 = vst.msk [vmem:[%s1394_s3 + $0x18] sm:$0xf] %vm645_vm1, %v587_v9  ;;  %v453_v13 = vadd.f32 %v1069_v33, %v452_v11  ;;  %v493_v14 = vadd.f32 %v1069_v33, %v492_v12  ;;  %v374_v15 = vpop.f32.mrf.mxu0  ;;  %v414_v16 = vpop.f32.mrf.mxu1 }
  0xbb   :  { %668 = vst.msk [vmem:[%s1394_s3 + $0x58] sm:$0xf] %vm645_vm1, %v603_v10  ;;  %v375_v17 = vadd.f32 %v1069_v33, %v374_v15  ;;  %v415_v18 = vadd.f32 %v1069_v33, %v414_v16 }
  0xbc   :  { %v555_v19 = vmax.f32 %v453_v13, 0.0  ;;  %v571_v20 = vmax.f32 %v493_v14, 0.0 }
  0xbd   :  { %v524_v21 = vmax.f32 %v375_v17, 0.0  ;;  %v540_v22 = vmax.f32 %v415_v18, 0.0 }
  0xbe   :  { %v619_v23 = vpack.c.bf16 %v555_v19, %v555_v19  ;;  %v635_v24 = vpack.c.bf16 %v571_v20, %v571_v20 }
  0xbf   :  { %v588_v25 = vpack.c.bf16 %v524_v21, %v524_v21  ;;  %v604_v26 = vpack.c.bf16 %v540_v22, %v540_v22 }
  0xc0   :  { %684 = vst.msk [vmem:[%s1394_s3 + $0x98] sm:$0xf] %vm645_vm1, %v619_v23 }
  0xc1   :  { %700 = vst.msk [vmem:[%s1394_s3 + $0xd8] sm:$0xf] %vm645_vm1, %v635_v24  ;;  %v454_v27 = vpop.f32.mrf.mxu2  ;;  %v494_v28 = vpop.f32.mrf.mxu3 }
  0xc2   :  { %653 = vst.msk [vmem:[%s1394_s3 + $0x1c] sm:$0xf] %vm645_vm1, %v588_v25  ;;  %v455_v29 = vadd.f32 %v1069_v33, %v454_v27  ;;  %v495_v30 = vadd.f32 %v1069_v33, %v494_v28  ;;  %v377_v31 = vpop.f32.mrf.mxu0  ;;  %v417_v32 = vpop.f32.mrf.mxu1 }
  0xc3   :  { %669 = vst.msk [vmem:[%s1394_s3 + $0x5c] sm:$0xf] %vm645_vm1, %v604_v26  ;;  %v378_v34 = vadd.f32 %v1069_v33, %v377_v31  ;;  %v418_v35 = vadd.f32 %v1069_v33, %v417_v32 }
  0xc4   :  { %v556_v36 = vmax.f32 %v455_v29, 0.0  ;;  %v572_v37 = vmax.f32 %v495_v30, 0.0 }
  0xc5   :  { %v525_v38 = vmax.f32 %v378_v34, 0.0  ;;  %v541_v39 = vmax.f32 %v418_v35, 0.0 }
  0xc6   :  { %v620_v40 = vpack.c.bf16 %v556_v36, %v556_v36  ;;  %v636_v41 = vpack.c.bf16 %v572_v37, %v572_v37 }
  0xc7   :  { %v589_v42 = vpack.c.bf16 %v525_v38, %v525_v38  ;;  %v605_v43 = vpack.c.bf16 %v541_v39, %v541_v39 }
  0xc8   :  { %685 = vst.msk [vmem:[%s1394_s3 + $0x9c] sm:$0xf] %vm645_vm1, %v620_v40 }
  0xc9   :  { %701 = vst.msk [vmem:[%s1394_s3 + $0xdc] sm:$0xf] %vm645_vm1, %v636_v41  ;;  %v457_v44 = vpop.f32.mrf.mxu2  ;;  %v497_v45 = vpop.f32.mrf.mxu3 }
  0xca   :  { %654 = vst.msk [vmem:[%s1394_s3 + $0x20] sm:$0xf] %vm645_vm1, %v589_v42  ;;  %v458_v46 = vadd.f32 %v1069_v33, %v457_v44  ;;  %v498_v47 = vadd.f32 %v1069_v33, %v497_v45  ;;  %v379_v48 = vpop.f32.mrf.mxu0  ;;  %v419_v49 = vpop.f32.mrf.mxu1 }
  0xcb   :  { %670 = vst.msk [vmem:[%s1394_s3 + $0x60] sm:$0xf] %vm645_vm1, %v605_v43  ;;  %v380_v50 = vadd.f32 %v1069_v33, %v379_v48  ;;  %v420_v51 = vadd.f32 %v1069_v33, %v419_v49 }
  0xcc   :  { %v557_v52 = vmax.f32 %v458_v46, 0.0  ;;  %v573_v53 = vmax.f32 %v498_v47, 0.0 }
  0xcd   :  { %v526_v54 = vmax.f32 %v380_v50, 0.0  ;;  %v542_v55 = vmax.f32 %v420_v51, 0.0 }
  0xce   :  { %v621_v56 = vpack.c.bf16 %v557_v52, %v557_v52  ;;  %v637_v57 = vpack.c.bf16 %v573_v53, %v573_v53 }
  0xcf   :  { %v590_v58 = vpack.c.bf16 %v526_v54, %v526_v54  ;;  %v606_v59 = vpack.c.bf16 %v542_v55, %v542_v55 }
  0xd0   :  { %686 = vst.msk [vmem:[%s1394_s3 + $0xa0] sm:$0xf] %vm645_vm1, %v621_v56 }
  0xd1   :  { %702 = vst.msk [vmem:[%s1394_s3 + $0xe0] sm:$0xf] %vm645_vm1, %v637_v57  ;;  %v459_v60 = vpop.f32.mrf.mxu2  ;;  %v499_v61 = vpop.f32.mrf.mxu3 }
  0xd2   :  { %655 = vst.msk [vmem:[%s1394_s3 + $0x24] sm:$0xf] %vm645_vm1, %v590_v58  ;;  %v460_v62 = vadd.f32 %v1069_v33, %v459_v60  ;;  %v500_v63 = vadd.f32 %v1069_v33, %v499_v61  ;;  %v382_v0 = vpop.f32.mrf.mxu0  ;;  %v422_v1 = vpop.f32.mrf.mxu1 }
  0xd3   :  { %671 = vst.msk [vmem:[%s1394_s3 + $0x64] sm:$0xf] %vm645_vm1, %v606_v59  ;;  %v383_v2 = vadd.f32 %v1069_v33, %v382_v0  ;;  %v423_v3 = vadd.f32 %v1069_v33, %v422_v1 }
  0xd4   :  { %v558_v4 = vmax.f32 %v460_v62, 0.0  ;;  %v574_v5 = vmax.f32 %v500_v63, 0.0 }
  0xd5   :  { %v527_v6 = vmax.f32 %v383_v2, 0.0  ;;  %v543_v7 = vmax.f32 %v423_v3, 0.0 }
  0xd6   :  { %v622_v8 = vpack.c.bf16 %v558_v4, %v558_v4  ;;  %v638_v9 = vpack.c.bf16 %v574_v5, %v574_v5 }
  0xd7   :  { %v591_v10 = vpack.c.bf16 %v527_v6, %v527_v6  ;;  %v607_v11 = vpack.c.bf16 %v543_v7, %v543_v7 }
  0xd8   :  { %687 = vst.msk [vmem:[%s1394_s3 + $0xa4] sm:$0xf] %vm645_vm1, %v622_v8 }
  0xd9   :  { %703 = vst.msk [vmem:[%s1394_s3 + $0xe4] sm:$0xf] %vm645_vm1, %v638_v9  ;;  %v462_v12 = vpop.f32.mrf.mxu2  ;;  %v502_v13 = vpop.f32.mrf.mxu3 }
  0xda   :  { %656 = vst.msk [vmem:[%s1394_s3 + $0x28] sm:$0xf] %vm645_vm1, %v591_v10  ;;  %v463_v14 = vadd.f32 %v1069_v33, %v462_v12  ;;  %v503_v15 = vadd.f32 %v1069_v33, %v502_v13  ;;  %v384_v16 = vpop.f32.mrf.mxu0  ;;  %v424_v17 = vpop.f32.mrf.mxu1 }
  0xdb   :  { %672 = vst.msk [vmem:[%s1394_s3 + $0x68] sm:$0xf] %vm645_vm1, %v607_v11  ;;  %v385_v18 = vadd.f32 %v1069_v33, %v384_v16  ;;  %v425_v19 = vadd.f32 %v1069_v33, %v424_v17 }
  0xdc   :  { %v559_v20 = vmax.f32 %v463_v14, 0.0  ;;  %v575_v21 = vmax.f32 %v503_v15, 0.0 }
  0xdd   :  { %v528_v22 = vmax.f32 %v385_v18, 0.0  ;;  %v544_v23 = vmax.f32 %v425_v19, 0.0 }
  0xde   :  { %v623_v24 = vpack.c.bf16 %v559_v20, %v559_v20  ;;  %v639_v25 = vpack.c.bf16 %v575_v21, %v575_v21 }
  0xdf   :  { %v592_v26 = vpack.c.bf16 %v528_v22, %v528_v22  ;;  %v608_v27 = vpack.c.bf16 %v544_v23, %v544_v23 }
  0xe0   :  { %688 = vst.msk [vmem:[%s1394_s3 + $0xa8] sm:$0xf] %vm645_vm1, %v623_v24 }
  0xe1   :  { %704 = vst.msk [vmem:[%s1394_s3 + $0xe8] sm:$0xf] %vm645_vm1, %v639_v25  ;;  %v464_v28 = vpop.f32.mrf.mxu2  ;;  %v504_v29 = vpop.f32.mrf.mxu3 }
  0xe2   :  { %657 = vst.msk [vmem:[%s1394_s3 + $0x2c] sm:$0xf] %vm645_vm1, %v592_v26  ;;  %v465_v30 = vadd.f32 %v1069_v33, %v464_v28  ;;  %v505_v31 = vadd.f32 %v1069_v33, %v504_v29  ;;  %v387_v32 = vpop.f32.mrf.mxu0  ;;  %v427_v34 = vpop.f32.mrf.mxu1 }
  0xe3   :  { %673 = vst.msk [vmem:[%s1394_s3 + $0x6c] sm:$0xf] %vm645_vm1, %v608_v27  ;;  %v388_v35 = vadd.f32 %v1069_v33, %v387_v32  ;;  %v428_v36 = vadd.f32 %v1069_v33, %v427_v34 }
  0xe4   :  { %v560_v37 = vmax.f32 %v465_v30, 0.0  ;;  %v576_v38 = vmax.f32 %v505_v31, 0.0 }
  0xe5   :  { %v529_v39 = vmax.f32 %v388_v35, 0.0  ;;  %v545_v40 = vmax.f32 %v428_v36, 0.0 }
  0xe6   :  { %v624_v41 = vpack.c.bf16 %v560_v37, %v560_v37  ;;  %v640_v42 = vpack.c.bf16 %v576_v38, %v576_v38 }
  0xe7   :  { %v593_v43 = vpack.c.bf16 %v529_v39, %v529_v39  ;;  %v609_v44 = vpack.c.bf16 %v545_v40, %v545_v40 }
  0xe8   :  { %689 = vst.msk [vmem:[%s1394_s3 + $0xac] sm:$0xf] %vm645_vm1, %v624_v41 }
  0xe9   :  { %705 = vst.msk [vmem:[%s1394_s3 + $0xec] sm:$0xf] %vm645_vm1, %v640_v42  ;;  %v467_v45 = vpop.f32.mrf.mxu2  ;;  %v507_v46 = vpop.f32.mrf.mxu3 }
  0xea   :  { %658 = vst.msk [vmem:[%s1394_s3 + $0x30] sm:$0xf] %vm645_vm1, %v593_v43  ;;  %v468_v47 = vadd.f32 %v1069_v33, %v467_v45  ;;  %v508_v48 = vadd.f32 %v1069_v33, %v507_v46  ;;  %v389_v49 = vpop.f32.mrf.mxu0  ;;  %v429_v50 = vpop.f32.mrf.mxu1 }
  0xeb   :  { %674 = vst.msk [vmem:[%s1394_s3 + $0x70] sm:$0xf] %vm645_vm1, %v609_v44  ;;  %v390_v51 = vadd.f32 %v1069_v33, %v389_v49  ;;  %v430_v52 = vadd.f32 %v1069_v33, %v429_v50 }
  0xec   :  { %v561_v53 = vmax.f32 %v468_v47, 0.0  ;;  %v577_v54 = vmax.f32 %v508_v48, 0.0 }
  0xed   :  { %v530_v55 = vmax.f32 %v390_v51, 0.0  ;;  %v546_v56 = vmax.f32 %v430_v52, 0.0 }
  0xee   :  { %v625_v57 = vpack.c.bf16 %v561_v53, %v561_v53  ;;  %v641_v58 = vpack.c.bf16 %v577_v54, %v577_v54 }
  0xef   :  { %v594_v59 = vpack.c.bf16 %v530_v55, %v530_v55  ;;  %v610_v60 = vpack.c.bf16 %v546_v56, %v546_v56 }
  0xf0   :  { %690 = vst.msk [vmem:[%s1394_s3 + $0xb0] sm:$0xf] %vm645_vm1, %v625_v57 }
  0xf1   :  { %706 = vst.msk [vmem:[%s1394_s3 + $0xf0] sm:$0xf] %vm645_vm1, %v641_v58  ;;  %v469_v61 = vpop.f32.mrf.mxu2  ;;  %v509_v62 = vpop.f32.mrf.mxu3 }
  0xf2   :  { %659 = vst.msk [vmem:[%s1394_s3 + $0x34] sm:$0xf] %vm645_vm1, %v594_v59  ;;  %v470_v63 = vadd.f32 %v1069_v33, %v469_v61  ;;  %v510_v0 = vadd.f32 %v1069_v33, %v509_v62  ;;  %v392_v1 = vpop.f32.mrf.mxu0  ;;  %v432_v2 = vpop.f32.mrf.mxu1 }
  0xf3   :  { %675 = vst.msk [vmem:[%s1394_s3 + $0x74] sm:$0xf] %vm645_vm1, %v610_v60  ;;  %v393_v3 = vadd.f32 %v1069_v33, %v392_v1  ;;  %v433_v4 = vadd.f32 %v1069_v33, %v432_v2 }
  0xf4   :  { %v562_v5 = vmax.f32 %v470_v63, 0.0  ;;  %v578_v6 = vmax.f32 %v510_v0, 0.0 }
  0xf5   :  { %v531_v7 = vmax.f32 %v393_v3, 0.0  ;;  %v547_v8 = vmax.f32 %v433_v4, 0.0 }
  0xf6   :  { %v626_v9 = vpack.c.bf16 %v562_v5, %v562_v5  ;;  %v642_v10 = vpack.c.bf16 %v578_v6, %v578_v6 }
  0xf7   :  { %v595_v11 = vpack.c.bf16 %v531_v7, %v531_v7  ;;  %v611_v12 = vpack.c.bf16 %v547_v8, %v547_v8 }
  0xf8   :  { %691 = vst.msk [vmem:[%s1394_s3 + $0xb4] sm:$0xf] %vm645_vm1, %v626_v9 }
  0xf9   :  { %707 = vst.msk [vmem:[%s1394_s3 + $0xf4] sm:$0xf] %vm645_vm1, %v642_v10  ;;  %v472_v13 = vpop.f32.mrf.mxu2  ;;  %v512_v14 = vpop.f32.mrf.mxu3 }
  0xfa   :  { %660 = vst.msk [vmem:[%s1394_s3 + $0x38] sm:$0xf] %vm645_vm1, %v595_v11  ;;  %v473_v15 = vadd.f32 %v1069_v33, %v472_v13  ;;  %v513_v16 = vadd.f32 %v1069_v33, %v512_v14  ;;  %v394_v17 = vpop.f32.mrf.mxu0  ;;  %v434_v18 = vpop.f32.mrf.mxu1 }
  0xfb   :  { %676 = vst.msk [vmem:[%s1394_s3 + $0x78] sm:$0xf] %vm645_vm1, %v611_v12  ;;  %v395_v19 = vadd.f32 %v1069_v33, %v394_v17  ;;  %v435_v20 = vadd.f32 %v1069_v33, %v434_v18 }
  0xfc   :  { %v563_v21 = vmax.f32 %v473_v15, 0.0  ;;  %v579_v22 = vmax.f32 %v513_v16, 0.0 }
  0xfd   :  { %v532_v23 = vmax.f32 %v395_v19, 0.0  ;;  %v548_v24 = vmax.f32 %v435_v20, 0.0 }
  0xfe   :  { %v627_v25 = vpack.c.bf16 %v563_v21, %v563_v21  ;;  %v643_v26 = vpack.c.bf16 %v579_v22, %v579_v22 }
  0xff   :  { %v596_v27 = vpack.c.bf16 %v532_v23, %v532_v23  ;;  %v612_v28 = vpack.c.bf16 %v548_v24, %v548_v24 }
 0x100   :  { %692 = vst.msk [vmem:[%s1394_s3 + $0xb8] sm:$0xf] %vm645_vm1, %v627_v25 }
 0x101   :  { %708 = vst.msk [vmem:[%s1394_s3 + $0xf8] sm:$0xf] %vm645_vm1, %v643_v26  ;;  %v474_v29 = vpop.f32.mrf.mxu2  ;;  %v514_v30 = vpop.f32.mrf.mxu3 }
 0x102   :  { %661 = vst.msk [vmem:[%s1394_s3 + $0x3c] sm:$0xf] %vm645_vm1, %v596_v27  ;;  %v475_v31 = vadd.f32 %v1069_v33, %v474_v29  ;;  %v515_v32 = vadd.f32 %v1069_v33, %v514_v30 }
 0x103   :  { %677 = vst.msk [vmem:[%s1394_s3 + $0x7c] sm:$0xf] %vm645_vm1, %v612_v28 }
 0x104   :  { %v564_v34 = vmax.f32 %v475_v31, 0.0  ;;  %v580_v35 = vmax.f32 %v515_v32, 0.0 }
 0x106   :  { %v628_v36 = vpack.c.bf16 %v564_v34, %v564_v34  ;;  %v644_v37 = vpack.c.bf16 %v580_v35, %v580_v35 }
 0x108   :  { %693 = vst.msk [vmem:[%s1394_s3 + $0xbc] sm:$0xf] %vm645_vm1, %v628_v36 }
 0x109   :  { %709 = vst.msk [vmem:[%s1394_s3 + $0xfc] sm:$0xf] %vm645_vm1, %v644_v37 }

// kernel: bottleneck_forward.3
= control target key start
LH: loop header
LB: loop body
LE: loop exit
PB: predicated region body
PF: predicated region fallthrough
CT: control target
= control target key end

     0   :  { %s1877_s27 = smov 0   ;;  %s2355_s0 = inlined_call_operand.vmem [shape: bf16[2,336,8], index: 0, kind: input, shape index: {}]   ;;  %s2356_s1 = inlined_call_operand.vmem [shape: bf16[72,8], index: 1, kind: input, shape index: {}]   ;;  %s2357_s2 = inlined_call_operand.vmem [shape: f32[1,8], index: 2, kind: input, shape index: {}]   ;;  %s2358_s3 = inlined_call_operand.vmem [shape: bf16[8,32], index: 3, kind: input, shape index: {}]   ;;  %s2359_s4 = inlined_call_operand.vmem [shape: f32[1,32], index: 4, kind: input, shape index: {}]   ;;  %s2360_s5 = inlined_call_operand.vmem [shape: bf16[2,72,16], index: 5, kind: input, shape index: {}]   ;;  %s2361_s6 = inlined_call_operand.vmem [shape: bf16[16,32], index: 6, kind: input, shape index: {}]   ;;  %s2362_s7 = inlined_call_operand.vmem [shape: f32[1,32], index: 7, kind: input, shape index: {}]   ;;  %s2363_s8 = inlined_call_operand.vmem [shape: bf16[2,72,32], index: 8, kind: output, shape index: {}]  }
   0x1 LB: > { %s1625_s28 = sadd.s32 4294967295, %s1822_s27   ;;  %p1629_p0 = scmp.ge.s32.totalorder %s1822_s27, 1  ;;  %s1822_s27 = sphi %s1877_s27, %s18_s27  }
   0x2   : > { %p272_p1 = scmp.lt.s32.totalorder %s1822_s27, 3 }
   0x4   : > { %p273_p2 = pnand %p1629_p0, %p272_p1 }
   0x5   : > { %p311_p3 = scmp.lt.s32.totalorder (!%p273_p2), %s1625_s28, 1  ;;  %s1824_s11 = smov (!%p273_p2), 24  }
   0x6   : > { %276 = sbr.rel (%p273_p2) target bundleno = 564 (0x234), region = 52  ;;  %s1825_s12 = smov (!%p273_p2), 56  }
   0x7   : > { %s1826_s13 = smov (!%p273_p2), 64   ;;  %s1827_s14 = smov (!%p273_p2), 8  }
   0x8   : > { %s1828_s15 = smov (!%p273_p2), 40   ;;  %s1829_s16 = smov (!%p273_p2), 32  }
   0x9   : > { %s1830_s17 = smov (!%p273_p2), 16   ;;  %s1831_s18 = smov (!%p273_p2), 48  }
   0xb   : > { %s2367_s28 = smov (!%p311_p3, %s1625_s28), 1  ;;  %vm434_vm0 = vcmask 1046528   ;;  %vm385_vm1 = vsmask.f32 7424  ;;  %vm452_vm2 = vsmask.f32 6400 }
   0xc   : > { %s1783_s29 = smul.u32 168, %s2367_s28  ;;  %vm623_vm3 = vcmask 1043456   ;;  %vm1289_vm4 = vcmask 1042432   ;;  %vm1305_vm5 = vsmask.f32 2304  ;;  %vm548_vm6 = vcmask 64512  }
   0xd   : > { %vm553_vm7 = vcmask 130048   ;;  %vm558_vm8 = vcmask 195584   ;;  %vm563_vm9 = vcmask 261120   ;;  %vm568_vm10 = vcmask 326656  }
   0xe   : > { %s1891_s10 = scalar_lea.vmem %s2355_s0, %s1783_s29  ;;  %vm573_vm11 = vcmask 392192   ;;  %vm578_vm12 = vcmask 457728   ;;  %vm583_vm13 = vcmask 523264   ;;  %vm618_vm14 = vcmask 588800  }
   0xf   : > { %v1639_v0 = vld [vmem:[%s1891_s10 + $0x50] sm:$0xe]  ;;  %v1755_v1 = vld [vmem:[%s1891_s10 + $0x50] sm:$0xf0]  ;;  %v1643_v2 = vld [vmem:[%s1891_s10 + $0x58] sm:$0xf] }
  0x10   : > { %v1756_v3 = vld [vmem:[%s1891_s10 + $0x58] sm:$0x70]  ;;  %v1897_v4 = vor.u32 %v1755_v1, %v1639_v0  ;;  %v348_v5 = vld [vmem:[%s1891_s10 + $0x30] sm:$0xf]  ;;  %v360_v6 = vld [vmem:[%s1891_s10 + $0x2c] sm:$0xe] }
  0x11   : > { %v1901_v7 = vor.u32 %v1756_v3, %v1643_v2  ;;  %v1655_v8 = vld [vmem:[%s1891_s10 + $0x34] sm:$0xf]  ;;  %v1759_v9 = vld [vmem:[%s1891_s10 + $0x34] sm:$0x70]  ;;  %v381_v10 = vunpack.c.l.b16 %v348_v5  ;;  %v523_v11 = vunpack.c.l.b16 %v360_v6  ;;  %v1906_v12 = vld [vmem:[%s1891_s10 + $0x8] sm:$0xff]   ;;  %vm1435_vm15 = vcmask 1044480  }
  0x12   : > { %v435_v13 = vrot.slane %v1897_v4, 1  ;;  %v1656_v14 = vor.u32 %v1759_v9, %v1655_v8  ;;  %v363_v15 = vld [vmem:[%s1891_s10 + $0x4] sm:$0xe]  ;;  %v364_v16 = vld [vmem:[%s1891_s10 + $0x10] sm:$0x7]  ;;  %v1912_v17 = vunpack.c.l.b16 %v1906_v12  ;;  %v497_v18 = vunpack.c.h.b16 %v1906_v12  ;;  %v1754_v19 = vld [vmem:[%s1891_s10 + $0x28] sm:$0xff] }
  0x13   : > { %v436_v20 = vrot.slane %v1901_v7, 1  ;;  %v526_v21 = vpack.c.b16 %v381_v10, %v523_v11  ;;  %v537_v22 = vunpack.c.l.b16 %v363_v15  ;;  %v538_v23 = vunpack.c.l.b16 %v364_v16  ;;  %v349_v24 = vld [vmem:[%s1891_s10 + $0x34] sm:$0x3]  ;;  %v1647_v25 = vld [vmem:[%s1891_s10 + $0x78] sm:$0xe]  ;;  %v1942_v49 = vld [vmem:[%s1891_s10] sm:$0xff]  }
  0x14   : > { %v1919_v26 = vrot.slane %v1656_v14, 1  ;;  %v382_v27 = vunpack.c.l.b16 %v349_v24  ;;  %v387_v28 = vshrl.u32 %v1754_v19, 16  ;;  %v389_v29 = vshll.u32 %v1754_v19, 16  ;;  %v1757_v30 = vld [vmem:[%s1891_s10 + $0x78] sm:$0xf0] }
  0x15   : > { %v437_v31 = vsel %vm434_vm0, %v435_v13, %v436_v20  ;;  %v528_v32 = vrot.slane %v526_v21, 1  ;;  %v539_v33 = vpack.c.b16 %v1912_v17, %v537_v22  ;;  %v1928_v34 = vpack.c.b16 %v538_v23, %v497_v18  ;;  %v1651_v35 = vld [vmem:[%s1891_s10 + $0x80] sm:$0xf]  ;;  %v1758_v36 = vld [vmem:[%s1891_s10 + $0x80] sm:$0x70] }
  0x16   : > { %438 = vrot.lane.b32.xlu1 %v437_v31, %s1824_s11  ;;  %v1933_v37 = vpack.c.b16 %v382_v27, %v381_v10  ;;  %v391_v38 = vrot.slane %v389_v29, 1  ;;  %v1648_v39 = vor.u32 %v1757_v30, %v1647_v25  ;;  %v1652_v40 = vor.u32 %v1758_v36, %v1651_v35  ;;  %v345_v41 = vld [vmem:[%s1891_s10 + $0xc] sm:$0x3]  ;;  %v359_v11 = vld [vmem:[%s1891_s10 + $0x10] sm:$0x3]  ;;  %v1979_v35 = vld [vmem:[%s1891_s10 + $0x3c] sm:$0xff]  }
  0x17   : > { %v530_v42 = vsel %vm434_vm0, %v528_v32, %v1919_v26  ;;  %v541_v43 = vrot.slane %v539_v33, 1  ;;  %v542_v44 = vrot.slane %v1928_v34, 1  ;;  %v372_v45 = vunpack.c.l.b16 %v345_v41  ;;  %v1693_v32 = vld [vmem:[%s1891_s10 + $0x34] sm:$0xc]  ;;  %v1762_v33 = vld [vmem:[%s1891_s10 + $0x34] sm:$0xf0] }
  0x18   : > { %531 = vrot.lane.b32.xlu0 %v530_v42, %s1825_s12  ;;  %v394_v46 = vshll.u32 %v1933_v37, 16  ;;  %v454_v47 = vshrl.u32 %v1648_v39, 16  ;;  %v457_v48 = vshll.u32 %v1648_v39, 16  ;;  %v392_v50 = vor.u32 %v391_v38, %v387_v28  ;;  %v1982_v36 = vld [vmem:[%s1891_s10 + $0x40] sm:$0xf] }
  0x19   : > { %v462_v51 = vshrl.u32 %v1652_v40, 16  ;;  %v465_v52 = vshll.u32 %v1652_v40, 16  ;;  %v1945_v53 = vpack.c.b16 %v372_v45, %v1912_v17  ;;  %v543_v54 = vsel %vm434_vm0, %v541_v43, %v542_v44  ;;  %v1992_v45 = vld [vmem:[%s1891_s10 + $0x10] sm:$0xff]  }
  0x1a   : > { %v396_v55 = vrot.slane %v394_v46, 1  ;;  %v456_v56 = vrot.slane %v454_v47, 1  ;;  %v459_v57 = vrot.slane %v457_v48, 2  ;;  %v408_v60 = vshll.u32 %v1942_v49, 16  ;;  %v761_v46 = vld [vmem:[%s1891_s10 + $0xc] sm:$0xc] }
  0x1b   : > { %v464_v58 = vrot.slane %v462_v51, 1  ;;  %v467_v59 = vrot.slane %v465_v52, 2  ;;  %v406_v61 = vshrl.u32 %v1942_v49, 16  ;;  %v475_v62 = vshrl.u32 %v1897_v4, 16  ;;  %v1996_v48 = vld [vmem:[%s1891_s10 + $0x18] sm:$0xff]  }
  0x1c   : > { %v397_v63 = vsel %vm385_vm1, %v392_v50, %v396_v55  ;;  %v410_v0 = vrot.slane %v408_v60, 1  ;;  %v413_v1 = vshll.u32 %v1945_v53, 16  ;;  %v478_v2 = vshll.u32 %v1897_v4, 16 }
  0x1d   : > { %v477_v3 = vrot.slane %v475_v62, 1  ;;  %v483_v5 = vshrl.u32 %v1901_v7, 16  ;;  %v486_v6 = vshll.u32 %v1901_v7, 16  ;;  %v460_v8 = vor.u32 %v459_v57, %v456_v56  ;;  %v1701_v62 = vld [vmem:[%s1891_s10 + $0x84] sm:$0x8] }
  0x1e   : > { %544 = vrot.lane.b32.xlu1 %v543_v54, %s1826_s13  ;;  %v1959_v9 = vor.u32 %v467_v59, %v464_v58  ;;  %v480_v10 = vrot.slane %v478_v2, 2  ;;  %v411_v4 = vor.u32 %v410_v0, %v406_v61  ;;  %v415_v15 = vrot.slane %v413_v1, 1 }
  0x1f   : > { %v485_v13 = vrot.slane %v483_v5, 1  ;;  %v488_v14 = vrot.slane %v486_v6, 2  ;;  %v498_v21 = vunpack.c.l.b16 %v359_v11  ;;  %v1776_v23 = vunpack.c.h.b16 %v1942_v49  ;;  %v1765_v5 = vld [vmem:[%s1891_s10 + $0x8c] sm:$0xff] }
  0x20   : > { %401 = vrot.lane.b32.xlu0 %v397_v63, %s1827_s14  ;;  %v481_v16 = vor.u32 %v480_v10, %v477_v3  ;;  %v469_v22 = vsel %vm452_vm2, %v460_v8, %v1959_v9  ;;  %v416_v25 = vsel %vm385_vm1, %v411_v4, %v415_v15  ;;  %v398_v27 = vshrl.u32 %v1933_v37, 16  ;;  %v1764_v63 = vld [vmem:[%s1891_s10 + $0x84] sm:$0xf0]  ;;  %v772_v4 = vld [vmem:[%s1891_s10 + $0x5c] sm:$0x8] }
  0x21   : > { %v489_v19 = vor.u32 %v488_v14, %v485_v13  ;;  %v499_v28 = vpack.c.b16 %v1912_v17, %v1776_v23  ;;  %v500_v29 = vpack.c.b16 %v498_v21, %v497_v18  ;;  %v417_v31 = vshrl.u32 %v1945_v53, 16  ;;  %v1985_v17 = vld [vmem:[%s1891_s10 + $0x38] sm:$0xf0]   ;;  %v764_v14 = vld [vmem:[%s1891_s10 + $0x60] sm:$0xf] }
  0x22   : > { %v400_v37 = vor.u32 %v398_v27, %v396_v55  ;;  %v1694_v39 = vor.u32 %v1762_v33, %v1693_v32  ;;  %v1779_v50 = vunpack.c.l.b16 %v1992_v45  ;;  %v819_v51 = vunpack.c.l.b16 %v761_v46  ;;  %v773_v21 = vld [vmem:[%s1891_s10 + $0x6c] sm:$0x1]  ;;  %v1763_v27 = vld [vmem:[%s1891_s10 + $0x64] sm:$0xff]  ;;  %v763_v32 = vld [vmem:[%s1891_s10 + $0x5c] sm:$0xc] }
  0x23   : > { %v490_v24 = vsel %vm452_vm2, %v481_v16, %v489_v19  ;;  %v504_v30 = vshll.u32 %v499_v28, 16  ;;  %v509_v12 = vshll.u32 %v500_v29, 16  ;;  %v502_v18 = vshrl.u32 %v499_v28, 16 }
  0x24   : > { %491 = vrot.lane.b32.xlu2 %v490_v24, %s1828_s15  ;;  %v419_v40 = vor.u32 %v417_v31, %v415_v15  ;;  %v513_v42 = vshrl.u32 %v500_v29, 16  ;;  %v801_v47 = vshll.u32 %v1694_v39, 16  ;;  %v820_v54 = vunpack.c.l.b16 %v1996_v48 }
  0x25   : > { %v506_v38 = vrot.slane %v504_v30, 1  ;;  %v511_v41 = vrot.slane %v509_v12, 1  ;;  %v799_v55 = vshrl.u32 %v1694_v39, 16  ;;  %v806_v57 = vshll.u32 %v1979_v35, 16 }
  0x26   : > { %470 = vrot.lane.b32.xlu1 %v469_v22, %s1829_s16  ;;  %v803_v56 = vrot.slane %v801_v47, 1  ;;  %v821_v58 = vpack.c.b16 %v1779_v50, %v819_v51  ;;  %v1702_v2 = vor.u32 %v1764_v63, %v1701_v62  ;;  %v881_v16 = vshrl.u32 %v1765_v5, 16 }
  0x27   : > { %v507_v43 = vor.u32 %v506_v38, %v502_v18  ;;  %v515_v52 = vor.u32 %v513_v42, %v511_v41  ;;  %v808_v61 = vrot.slane %v806_v57, 1  ;;  %v847_v23 = vunpack.c.l.b16 %v764_v14  ;;  %v1819_v57 = vld [vmem:[%s1891_s10 + $0x40] sm:$0xf0]  }
  0x28   : > { %420 = vrot.lane.b32.xlu0 %v416_v25, %s1830_s17  ;;  %v804_v60 = vor.u32 %v803_v56, %v799_v55  ;;  %v826_v0 = vshll.u32 %v821_v58, 16  ;;  %v824_v8 = vshrl.u32 %v821_v58, 16  ;;  %v873_v13 = vshrl.u32 %v1702_v2, 16  ;;  %v1806_v55 = vld [vmem:[%s1891_s10 + $0x38] sm:$0xc]  ;;  %v2037_v56 = vld [vmem:[%s1891_s10 + $0x44] sm:$0xff]  }
  0x29   : > { %v512_v7 = vsel %vm385_vm1, %v507_v43, %v511_v41  ;;  %v876_v15 = vshll.u32 %v1702_v2, 16  ;;  %v900_v24 = vunpack.c.l.b16 %v772_v4  ;;  %v883_v29 = vrot.slane %v881_v16, 1  ;;  %v771_v41 = vld [vmem:[%s1891_s10 + $0x94] sm:$0x1] }
  0x2a   : > { %v809_v3 = vsel %vm385_vm1, %v804_v60, %v808_v61  ;;  %v828_v10 = vrot.slane %v826_v0, 1  ;;  %v875_v25 = vrot.slane %v873_v13, 1  ;;  %v901_v31 = vunpack.c.l.b16 %v773_v21  ;;  %v774_v60 = vld [vmem:[%s1891_s10 + $0x10] sm:$0xc]  ;;  %v1723_v21 = vld [vmem:[%s1891_s10 + $0x18] sm:$0x8] }
  0x2b   : > { %v878_v28 = vrot.slane %v876_v15, 2  ;;  %v902_v34 = vpack.c.b16 %v847_v23, %v900_v24  ;;  %v916_v12 = vshll.u32 %v1763_v27, 16  ;;  %v846_v18 = vunpack.c.l.b16 %v763_v32  ;;  %v1209_v24 = vld [vmem:[%s1891_s10 + $0x24] sm:$0x1] }
  0x2c   : > { %403 = vrot.lane.b32.xlu2 %v400_v37, %s1827_s14  ;;  %v829_v22 = vor.u32 %v828_v10, %v824_v8  ;;  %v913_v37 = vshrl.u32 %v1763_v27, 16  ;;  %v868_v51 = vunpack.c.l.b16 %v771_v41  ;;  %v1807_v8 = vor.u32 %v1985_v17, %v1806_v55 }
  0x2d   : > { %v879_v38 = vor.u32 %v878_v28, %v875_v25  ;;  %v905_v42 = vshrl.u32 %v902_v34, 16  ;;  %v850_v47 = vpack.c.b16 %v847_v23, %v846_v18  ;;  %v1812_v10 = vor.u32 %v1819_v57, %v1982_v36  ;;  %v2058_v23 = vld [vmem:[%s1891_s10 + $0x20] sm:$0xff]  }
  0x2e   : > { %440 = vrot.lane.b32.xlu1 %v436_v20, %s1824_s11  ;;  %v2002_v20 = vunpack.c.h.b16 %v1992_v45  ;;  %v915_v46 = vrot.slane %v913_v37, 1  ;;  %v871_v63 = vpack.c.b16 %v868_v51, %v868_v51  ;;  %v961_v16 = vrot.slane %v1807_v8, 1  ;;  %v1771_v8 = vld [vmem:[%s1891_s10 + $0x94] sm:$0xff] }
  0x2f   : > { %v907_v58 = vrot.slane %v905_v42, 1  ;;  %v852_v62 = vrot.slane %v850_v47, 1  ;;  %v948_v36 = vshrl.u32 %v1996_v48, 16  ;;  %v1260_v32 = vunpack.c.l.b16 %v1209_v24 }
  0x30   : > { %422 = vrot.lane.b32.xlu0 %v419_v40, %s1830_s17  ;;  %v822_v59 = vpack.c.b16 %v820_v54, %v2002_v20  ;;  %v903_v40 = vpack.c.b16 %v901_v31, %v901_v31  ;;  %v853_v54 = vrot.slane %v1763_v27, 1  ;;  %v969_v41 = vrot.slane %v1996_v48, 1 }
  0x31   : > { %v1355_v24 = vunpack.c.h.b16 %v2058_v23 }
  0x32   : > { %v831_v1 = vshll.u32 %v822_v59, 16  ;;  %v835_v6 = vshrl.u32 %v822_v59, 16 }
  0x34   : > { %516 = vrot.lane.b32.xlu2 %v512_v7, %s1831_s18  ;;  %v833_v11 = vrot.slane %v831_v1, 1  ;;  %v922_v7 = vshll.u32 %v903_v40, 16  ;;  %v932_v1 = vunpack.c.l.b16 %v774_v60 }
  0x36   : > { %518 = vrot.lane.b32.xlu1 %v515_v52, %s1831_s18  ;;  %v834_v33 = vsel %vm385_vm1, %v829_v22, %v833_v11  ;;  %v924_v0 = vrot.slane %v922_v7, 2  ;;  %v934_v13 = vpack.c.b16 %v2002_v20, %v932_v1  ;;  %v1768_v22 = vld [vmem:[%s1891_s10 + $0x18] sm:$0xf0] }
  0x37   : > { %v2067_v31 = vor.u32 %v1768_v22, %v1723_v21  ;;  %v1310_v21 = vshll.u32 %v1771_v8, 16 }
  0x38   : > { %493 = vrot.lane.b32.xlu0 %v489_v19, %s1828_s15  ;;  %v884_v19 = vshll.u32 %v1765_v5, 16  ;;  %v890_v5 = vshll.u32 %v871_v63, 16  ;;  %v939_v15 = vshll.u32 %v934_v13, 16  ;;  %v937_v27 = vshrl.u32 %v934_v13, 16 }
  0x39   : > { %v1265_v18 = vshll.u32 %v2067_v31, 16  ;;  %v968_v42 = vrot.slane %v934_v13, 1 }
  0x3a   : > { %v886_v30 = vrot.slane %v884_v19, 2  ;;  %v892_v4 = vrot.slane %v890_v5, 2  ;;  %v962_v19 = vrot.slane %v1812_v10, 1  ;;  %v941_v28 = vrot.slane %v939_v15, 1 }
  0x3b   : > { %v970_v7 = vsel %vm434_vm0, %v968_v42, %v969_v41 }
  0x3c   : > { %472 = vrot.lane.b32.xlu2 %v1959_v9, %s1829_s16  ;;  %v837_v9 = vor.u32 %v835_v6, %v833_v11  ;;  %v887_v39 = vor.u32 %v886_v30, %v883_v29  ;;  %v944_v11 = vshll.u32 %v1996_v48, 16  ;;  %v963_v29 = vsel %vm434_vm0, %v961_v16, %v962_v19 }
  0x3d   : > { %v2065_v30 = vunpack.c.l.b16 %v2058_v23  ;;  %v942_v37 = vor.u32 %v941_v28, %v937_v27  ;;  %v1752_v27 = vld [vmem:[%s2356_s1 + $0x18] sm:$0xff] }
  0x3e   : > { %813 = vrot.lane.b32.xlu1 %v809_v3, %s1827_s14  ;;  %v888_v52 = vsel %vm452_vm2, %v879_v38, %v887_v39  ;;  %v854_v3 = vsel %vm434_vm0, %v852_v62, %v853_v54  ;;  %v946_v17 = vrot.slane %v944_v11, 1  ;;  %v893_v25 = vsel %vm452_vm2, %v887_v39, %v892_v4  ;;  %v1727_v38 = vld [vmem:[%s1891_s10 + $0x40] sm:$0x8]  ;;  %v1769_v39 = vld [vmem:[%s1891_s10 + $0x40] sm:$0xf0] }
  0x3f   : > { %v335_v62 = vld [vmem:[%s2356_s1 + $0x20] sm:$0xf]  ;;  %v1217_v4 = vld [vmem:[%s1891_s10 + $0x1c] sm:$0x8]  ;;  %vm743_vm0 = vcmask 257024  }
  0x40   : > { %546 = vrot.lane.b32.xlu0 %v542_v44, %s1826_s13  ;;  %v810_v44 = vshrl.u32 %v1979_v35, 16  ;;  %v918_v35 = vrot.slane %v916_v12, 2  ;;  %v2073_v12 = vpack.c.b16 %v1260_v32, %v2065_v30  ;;  %v608_v1 = vunpack.c.l.b16 %v335_v62 }
  0x42   : > { %v812_v43 = vor.u32 %v810_v44, %v808_v61  ;;  %v919_v61 = vor.u32 %v918_v35, %v915_v46  ;;  %v1263_v46 = vshrl.u32 %v2067_v31, 16  ;;  %v1267_v35 = vrot.slane %v1265_v18, 1 }
  0x43   : > { %v1270_v47 = vshll.u32 %v2073_v12, 16  ;;  %v613_v11 = vpack.c.b16 %v608_v1, %v608_v1 }
  0x44   : > { %533 = vrot.lane.b32.xlu2 %v1919_v26, %s1825_s12  ;;  %v908_v26 = vshll.u32 %v902_v34, 16  ;;  %v925_v6 = vsel %vm452_vm2, %v919_v61, %v924_v0  ;;  %v1236_v34 = vunpack.c.h.b16 %v2037_v56  ;;  %v1268_v55 = vor.u32 %v1267_v35, %v1263_v46 }
  0x45   : > { %v2090_v57 = vrot.slane %v1270_v47, 1  ;;  %v2105_v15 = vsel %vm623_vm3, %v613_v11, 0 }
  0x46   : > { %840 = vrot.lane.b32.xlu1 %v837_v9, %s1830_s17  ;;  %v910_v59 = vrot.slane %v908_v26, 2  ;;  %v1208_v9 = vld [vmem:[%s1891_s10 + $0x4c] sm:$0x1]  ;;  %v947_v26 = vsel %vm385_vm1, %v942_v37, %v946_v17  ;;  %630 = vmatpush.bf16.msra.mxu0 %v2105_v15  ;;  %v1216_v37 = vld [vmem:[%s1891_s10 + $0x74] sm:$0x3] }
  0x47   : > { %v1237_v44 = vunpack.c.l.b16 %v1208_v9  ;;  %1033 = vmatpush.bf16.msra.mxu3 %v2105_v15  ;;  %v1328_v35 = vunpack.c.l.b16 %v1216_v37 }
  0x48   : > { %838 = vrot.lane.b32.xlu0 %v834_v33, %s1830_s17  ;;  %v911_v2 = vor.u32 %v910_v59, %v907_v58  ;;  %v950_v33 = vor.u32 %v948_v36, %v946_v17 }
  0x49   : > { %v1239_v40 = vpack.c.b16 %v1237_v44, %v1236_v34  ;;  %v1751_v44 = vld [vmem:[%s2356_s1 + $0x10] sm:$0xff] }
  0x4a   : > { %v920_v14 = vsel %vm452_vm2, %v911_v2, %v919_v61  ;;  %v1273_v2 = vsel %vm385_vm1, %v1268_v55, %v2090_v57  ;;  %631 = vmatpush.bf16.msra.mxu0 %v1752_v27  ;;  %v1329_v55 = vpack.c.b16 %v1328_v35, %v1328_v35 }
  0x4b   : > { %v1248_v51 = vshll.u32 %v1239_v40, 16  ;;  %v1252_v60 = vshrl.u32 %v1239_v40, 16  ;;  %1034 = vmatpush.bf16.msra.mxu3 %v1752_v27 }
  0x4c   : > { %815 = vrot.lane.b32.xlu2 %v812_v43, %s1827_s14  ;;  %v1728_v43 = vor.u32 %v1769_v39, %v1727_v38  ;;  %v1312_v38 = vrot.slane %v1310_v21, 6  ;;  %v1339_v1 = vshrl.u32 %v1329_v55, 16 }
  0x4d   : > { %v1250_v59 = vrot.slane %v1248_v51, 1 }
  0x4e   : > { %894 = vrot.lane.b32.xlu1 %v888_v52, %s1829_s16  ;;  %v1212_v52 = vld [vmem:[%s1891_s10 + $0x74] sm:$0x1]  ;;  %v1243_v48 = vshll.u32 %v1728_v43, 16  ;;  %v1241_v63 = vshrl.u32 %v1728_v43, 16  ;;  %632 = vmatpush.bf16.msra.mxu0 %v1751_v44  ;;  %v1341_v11 = vrot.slane %v1339_v1, 5 }
  0x4f   : > { %v1286_v58 = vunpack.c.l.b16 %v1212_v52  ;;  %1035 = vmatpush.bf16.msra.mxu3 %v1751_v44 }
  0x50   : > { %857 = vrot.lane.b32.xlu0 %v853_v54, %s1824_s11  ;;  %v1215_v54 = vld [vmem:[%s1891_s10 + $0x9c] sm:$0x3]  ;;  %v1245_v0 = vrot.slane %v1243_v48, 1 }
  0x51   : > { %v1302_v61 = vunpack.c.l.b16 %v1215_v54  ;;  %v1288_v5 = vpack.c.b16 %v1286_v58, %v1286_v58 }
  0x52   : > { %v1246_v13 = vor.u32 %v1245_v0, %v1241_v63  ;;  %v1220_v63 = vld [vmem:[%s1891_s10 + $0x4c] sm:$0xf]  ;;  %v1221_v0 = vld [vmem:[%s1891_s10 + $0x50] sm:$0x1] }
  0x53   : > { %v1304_v10 = vpack.c.b16 %v1302_v61, %v1302_v61  ;;  %v1291_v17 = vrot.slane %v1288_v5, 5 }
  0x54   : > { %855 = vrot.lane.b32.xlu2 %v854_v3, %s1824_s11  ;;  %v1770_v3 = vld [vmem:[%s1891_s10 + $0x6c] sm:$0xff]  ;;  %v1251_v32 = vsel %vm385_vm1, %v1246_v13, %v1250_v59 }
  0x55   : > { %v1290_v16 = vrot.slane %v1770_v3, 5  ;;  %v1315_v36 = vshrl.u32 %v1304_v10, 16  ;;  %v1318_v22 = vshll.u32 %v1304_v10, 16  ;;  %v1331_v28 = vshrl.u32 %v1770_v3, 16 }
  0x56   : > { %928 = vrot.lane.b32.xlu1 %v925_v6, %s1828_s15  ;;  %v1254_v6 = vor.u32 %v1252_v60, %v1250_v59 }
  0x57   : > { %v1317_v39 = vrot.slane %v1315_v36, 5  ;;  %v1320_v40 = vrot.slane %v1318_v22, 6  ;;  %v1333_v43 = vrot.slane %v1331_v28, 5 }
  0x58   : > { %926 = vrot.lane.b32.xlu0 %v920_v14, %s1828_s15  ;;  %v1219_v14 = vld [vmem:[%s1891_s10 + $0x28] sm:$0x1] }
  0x59   : > { %v2111_v9 = vunpack.c.l.b16 %v1219_v14  ;;  %v1321_v51 = vor.u32 %v1320_v40, %v1317_v39 }
  0x5c   : > { %896 = vrot.lane.b32.xlu2 %v893_v25, %s1829_s16  ;;  %v1354_v25 = vunpack.c.l.b16 %v1217_v4 }
  0x5e   : > { %964 = vrot.lane.b32.xlu1 %v963_v29, %s1825_s12  ;;  %v1334_v29 = vshll.u32 %v1770_v3, 16  ;;  %v1357_v42 = vpack.c.b16 %v2065_v30, %v1354_v25 }
  0x60   : > { %953 = vrot.lane.b32.xlu0 %v950_v33, %s1831_s18  ;;  %v1292_v33 = vsel %vm1289_vm4, %v1290_v16, %v1291_v17  ;;  %v1336_v46 = vrot.slane %v1334_v29, 6  ;;  %v1360_v61 = vshrl.u32 %v1357_v42, 16  ;;  %v1392_v29 = vpack.c.b16 %v2111_v9, %v2111_v9 }
  0x62   : > { %v1337_v48 = vor.u32 %v1336_v46, %v1333_v43 }
  0x64   : > { %951 = vrot.lane.b32.xlu2 %v947_v26, %s1831_s18  ;;  %v1274_v26 = vshrl.u32 %v2073_v12, 16  ;;  %v1750_v12 = vld [vmem:[%s2356_s1 + $0x8] sm:$0xff] }
  0x65   : > { %633 = vmatpush.bf16.msra.mxu0 %v1750_v12  ;;  %1036 = vmatpush.bf16.msra.mxu3 %v1750_v12 }
  0x66   : > { %973 = vrot.lane.b32.xlu1 %v969_v41, %s1826_s13  ;;  %v1358_v41 = vpack.c.b16 %v2111_v9, %v1355_v24  ;;  %v1276_v54 = vor.u32 %v1274_v26, %v2090_v57  ;;  %v1749_v57 = vld [vmem:[%s2356_s1] sm:$0xff]  ;;  %v1393_v24 = vrot.slane %v2058_v23, 5  ;;  %v1394_v23 = vrot.slane %v1392_v29, 5 }
  0x68   : > { %971 = vrot.lane.b32.xlu0 %v970_v7, %s1826_s13  ;;  %v1367_v52 = vshll.u32 %v1358_v41, 16  ;;  %v1362_v7 = vshll.u32 %v1357_v42, 16  ;;  %v1371_v60 = vshrl.u32 %v1358_v41, 16 }
  0x69   : > { %634 = vmatpush.bf16.msra.mxu0 %v1749_v57  ;;  %1037 = vmatpush.bf16.msra.mxu3 %v1749_v57 }
  0x6a   : > { %v1369_v59 = vrot.slane %v1367_v52, 1  ;;  %v1364_v62 = vrot.slane %v1362_v7, 1 }
  0x6c   : > { %966 = vrot.lane.b32.xlu2 %v962_v19, %s1825_s12  ;;  %v1307_v19 = vshrl.u32 %v1771_v8, 16  ;;  %v1365_v5 = vor.u32 %v1364_v62, %v1360_v61  ;;  %v1381_v8 = vunpack.c.l.b16 %v1221_v0  ;;  %v1373_v10 = vor.u32 %v1371_v60, %v1369_v59 }
  0x6d   : > { %1448 = vmatpush.bf16.msrb.mxu0 %v2105_v15 }
  0x6e   : > { %1277 = vrot.lane.b32.xlu1 %v1273_v2, %s1830_s17  ;;  %v1309_v18 = vrot.slane %v1307_v19, 5  ;;  %v1342_v2 = vshll.u32 %v1329_v55, 16  ;;  %v1370_v14 = vsel %vm385_vm1, %v1365_v5, %v1369_v59  ;;  %v753_v5 = vld [vmem:[%s1891_s10 + $0xc] sm:$0xe]  ;;  %vm747_vm1 = vcmask 254976  }
  0x70   : > { %1257 = vrot.lane.b32.xlu0 %v1254_v6, %s1827_s14  ;;  %v1313_v47 = vor.u32 %v1312_v38, %v1309_v18  ;;  %v1380_v6 = vunpack.c.l.b16 %v1220_v63  ;;  %v1344_v13 = vrot.slane %v1342_v2, 6  ;;  %v1395_v18 = vsel %vm1289_vm4, %v1393_v24, %v1394_v23 }
  0x71   : > { %1449 = vmatpush.bf16.msrb.mxu0 %v1752_v27 }
  0x72   : > { %v1322_v58 = vsel %vm1305_vm5, %v1313_v47, %v1321_v51  ;;  %v1382_v4 = vpack.c.b16 %v1380_v6, %v1236_v34  ;;  %v1345_v17 = vor.u32 %v1344_v13, %v1341_v11 }
  0x74   : > { %1255 = vrot.lane.b32.xlu2 %v1251_v32, %s1827_s14  ;;  %v1384_v21 = vrot.slane %v1382_v4, 5  ;;  %v1346_v25 = vsel %vm1305_vm5, %v1337_v48, %v1345_v17  ;;  %vm1192_vm5 = vcmask 257025  }
  0x75   : > { %1450 = vmatpush.bf16.msrb.mxu0 %v1751_v44 }
  0x76   : > { %1295 = vrot.lane.b32.xlu1 %v1292_v33, %s1824_s11 }
  0x78   : > { %1293 = vrot.lane.b32.xlu0 %v1290_v16, %s1824_s11  ;;  %v1383_v16 = vpack.c.b16 %v1381_v8, %v1381_v8 }
  0x79   : > { %1451 = vmatpush.bf16.msrb.mxu0 %v1750_v12 }
  0x7a   : > { %v1385_v36 = vrot.slane %v1383_v16, 5 }
  0x7c   : > { %1279 = vrot.lane.b32.xlu2 %v1276_v54, %s1830_s17  ;;  %v1386_v56 = vsel %vm1289_vm4, %v1384_v21, %v1385_v36 }
  0x7d   : > { %1452 = vmatpush.bf16.msrb.mxu0 %v1749_v57 }
  0x7e   : > { %1347 = vrot.lane.b32.xlu1 %v1337_v48, %s1828_s15  ;;  %v492_v3 = vpop.permute.xlu2 %491 }
  0x80   : > { %1325 = vrot.lane.b32.xlu0 %v1322_v58, %s1829_s16 }
  0x84   : > { %1323 = vrot.lane.b32.xlu2 %v1313_v47, %s1829_s16 }
  0x86   : > { %1376 = vrot.lane.b32.xlu1 %v1373_v10, %s1831_s18  ;;  %v404_v19 = vpop.permute.xlu2 %403  ;;  %v782_v10 = vunpack.c.l.b16 %v753_v5 }
  0x87   : > { %v552_v35 = vsel %vm548_vm6, %v1945_v53, %v404_v19 }
  0x88   : > { %v439_v15 = vpop.permute.xlu1 %438  ;;  %1374 = vrot.lane.b32.xlu0 %v1370_v14, %s1831_s18  ;;  %v786_v4 = vpack.c.b16 %v1779_v50, %v782_v10 }
  0x8a   : > { %v532_v22 = vpop.permute.xlu0 %531 }
  0x8c   : > { %1349 = vrot.lane.b32.xlu2 %v1346_v25, %s1828_s15  ;;  %s1784_s15 = smul.u32 36, %s2367_s28 }
  0x8e   : > { %1396 = vrot.lane.b32.xlu1 %v1393_v24, %s1826_s13  ;;  %v517_v34 = vpop.permute.xlu2 %516  ;;  %s2249_s18 = scalar_lea.vmem %s2360_s5, %s1784_s15  ;;  %s2297_s25 = scalar_lea.vmem %s2363_s8, %s1784_s15 }
  0x90   : > { %v545_v27 = vpop.permute.xlu1 %544  ;;  %1389 = vrot.lane.b32.xlu0 %v1386_v56, %s1825_s12 }
  0x92   : > { %v402_v28 = vpop.permute.xlu0 %401 }
  0x93   : > { %v550_v44 = vsel %vm548_vm6, %v1942_v49, %v402_v28 }
  0x94   : > { %1387 = vrot.lane.b32.xlu2 %v1384_v21, %s1825_s12 }
  0x96   : > { %v473_v32 = vpop.permute.xlu2 %472 }
  0x98   : > { %v471_v33 = vpop.permute.xlu1 %470 }
  0x9a   : > { %v421_v37 = vpop.permute.xlu0 %420 }
  0x9b   : > { %v555_v38 = vsel %vm553_vm7, %v550_v44, %v421_v37 }
  0x9c   : > { %v560_v9 = vsel %vm558_vm8, %v555_v38, %v439_v15  ;;  %1398 = vrot.lane.b32.xlu2 %v1395_v18, %s1826_s13 }
  0x9d   : > { %v565_v39 = vsel %vm563_vm9, %v560_v9, %v471_v33 }
  0x9e   : > { %v570_v40 = vsel %vm568_vm10, %v565_v39, %v492_v3  ;;  %v534_v41 = vpop.permute.xlu2 %533  ;;  %v756_v3 = vld [vmem:[%s1891_s10 + $0x18] sm:$0x7] }
  0x9f   : > { %v575_v49 = vsel %vm573_vm11, %v570_v40, %v517_v34  ;;  %v785_v6 = vunpack.c.l.b16 %v756_v3 }
  0xa0   : > { %v441_v42 = vpop.permute.xlu1 %440  ;;  %v580_v26 = vsel %vm578_vm12, %v575_v49, %v532_v22 }
  0xa1   : > { %v585_v43 = vsel %vm583_vm13, %v580_v26, %v545_v27  ;;  %v787_v13 = vpack.c.b16 %v785_v6, %v2002_v20 }
  0xa2   : > { %v423_v46 = vpop.permute.xlu0 %422  ;;  %1673 = vmatmul.msk.bf16.vlgmr.msra.gmra.mxu0 %vm618_vm14, %v585_v43 }
  0xa3   : > { %v557_v47 = vsel %vm553_vm7, %v552_v35, %v423_v46 }
  0xa4   : > { %v562_v52 = vsel %vm558_vm8, %v557_v47, %v441_v42 }
  0xa5   : > { %v567_v12 = vsel %vm563_vm9, %v562_v52, %v473_v32 }
  0xa6   : > { %v816_v51 = vpop.permute.xlu2 %815 }
  0xa7   : > { %v980_v16 = vsel %vm548_vm6, %v787_v13, %v816_v51 }
  0xa8   : > { %v519_v7 = vpop.permute.xlu1 %518 }
  0xaa   : > { %v494_v54 = vpop.permute.xlu0 %493 }
  0xab   : > { %v572_v48 = vsel %vm568_vm10, %v567_v12, %v494_v54 }
  0xac   : > { %v577_v55 = vsel %vm573_vm11, %v572_v48, %v519_v7 }
  0xad   : > { %v582_v60 = vsel %vm578_vm12, %v577_v55, %v534_v41  ;;  %v1229_v55 = vpack.c.b16 %v2065_v30, %v2065_v30 }
  0xae   : > { %v856_v58 = vpop.permute.xlu2 %855 }
  0xb0   : > { %v814_v59 = vpop.permute.xlu1 %813 }
  0xb1   : > { %v977_v15 = vsel %vm548_vm6, %v786_v4, %v814_v59 }
  0xb2   : > { %v547_v53 = vpop.permute.xlu0 %546 }
  0xb3   : > { %v587_v61 = vsel %vm583_vm13, %v582_v60, %v547_v53 }
  0xb4   : > { %1674 = vmatmul.msk.bf16.gmra.mxu0 %vm618_vm14, %v587_v61 }
  0xb6   : > { %v897_v62 = vpop.permute.xlu2 %896 }
  0xb8   : > { %v841_v57 = vpop.permute.xlu1 %840 }
  0xb9   : > { %v984_v17 = vsel %vm553_vm7, %v980_v16, %v841_v57 }
  0xba   : > { %v839_v63 = vpop.permute.xlu0 %838 }
  0xbb   : > { %v982_v22 = vsel %vm553_vm7, %v977_v15, %v839_v63  ;;  %v337_v15 = vld [vmem:[%s2358_s3] sm:$0xf] }
  0xbc   : > { %v986_v20 = vsel %vm558_vm8, %v982_v22, %v856_v58  ;;  %v1753_v22 = vld [vmem:[%s2361_s6] sm:$0xff] }
  0xbe   : > { %v952_v0 = vpop.permute.xlu2 %951 }
  0xc0   : > { %v895_v1 = vpop.permute.xlu1 %894 }
  0xc1   : > { %v990_v50 = vsel %vm563_vm9, %v986_v20, %v895_v1 }
  0xc2   : > { %v858_v2 = vpop.permute.xlu0 %857 }
  0xc3   : > { %v988_v21 = vsel %vm558_vm8, %v984_v17, %v858_v2 }
  0xc4   : > { %v992_v25 = vsel %vm563_vm9, %v988_v21, %v897_v62  ;;  %v662_v21 = vsel %vm623_vm3, %v337_v15, 0 }
  0xc5   : > { %671 = vmatpush.bf16.msra.mxu1 %v662_v21  ;;  %1782 = vmatpush.bf16.msra.mxu2 %v662_v21 }
  0xc6   : > { %v967_v8 = vpop.permute.xlu2 %966  ;;  %1481 = vmatpush.bf16.msrb.mxu3 %v662_v21 }
  0xc8   : > { %v929_v11 = vpop.permute.xlu1 %928 }
  0xc9   : > { %v996_v45 = vsel %vm568_vm10, %v992_v25, %v929_v11  ;;  %1068 = vmatpush.bf16.msrb.mxu1 %v662_v21  ;;  %719 = vmatpush.bf16.msrb.mxu2 %v1753_v22 }
  0xca   : > { %v927_v14 = vpop.permute.xlu0 %926 }
  0xcb   : > { %v994_v34 = vsel %vm568_vm10, %v990_v50, %v927_v14 }
  0xcc   : > { %v998_v29 = vsel %vm573_vm11, %v994_v34, %v952_v0 }
  0xce   : > { %v1256_v19 = vpop.permute.xlu2 %1255 }
  0xcf   : > { %v1401_v58 = vsel %vm548_vm6, %v2067_v31, %v1256_v19 }
  0xd0   : > { %v965_v36 = vpop.permute.xlu1 %964 }
  0xd1   : > { %v1002_v33 = vsel %vm578_vm12, %v998_v29, %v965_v36 }
  0xd2   : > { %v954_v24 = vpop.permute.xlu0 %953 }
  0xd3   : > { %v1000_v56 = vsel %vm573_vm11, %v996_v45, %v954_v24  ;;  %v2235_v24 = vld [vmem:[%s2357_s2] ss:$0 sm:$0xff] }
  0xd4   : > { %v1004_v27 = vsel %vm578_vm12, %v1000_v56, %v967_v8 }
  0xd6   : > { %v1280_v32 = vpop.permute.xlu2 %1279 }
  0xd8   : > { %v974_v28 = vpop.permute.xlu1 %973 }
  0xd9   : > { %v1008_v23 = vsel %vm583_vm13, %v1004_v27, %v974_v28 }
  0xda   : > { %v1016_v44 = vshrl.u32 %v1008_v23, 16  ;;  %v1019_v37 = vshll.u32 %v1008_v23, 16  ;;  %v972_v18 = vpop.permute.xlu0 %971 }
  0xdb   : > { %v1006_v38 = vsel %vm583_vm13, %v1002_v33, %v972_v18  ;;  %v1683_v18 = vld [vmem:[%s2249_s18 + $0x8] sm:$0xf] }
  0xdc   : > { %v1018_v9 = vrot.slane %v1016_v44, 1  ;;  %v1021_v39 = vrot.slane %v1019_v37, 2  ;;  %v1009_v40 = vshrl.u32 %v1006_v38, 16  ;;  %v1012_v49 = vshll.u32 %v1006_v38, 16  ;;  %v1760_v37 = vld [vmem:[%s2249_s18] sm:$0xff] }
  0xdd   : > { %v1761_v38 = vld [vmem:[%s2249_s18 + $0x8] sm:$0x30] }
  0xde   : > { %v1011_v41 = vrot.slane %v1009_v40, 1  ;;  %v1014_v42 = vrot.slane %v1012_v49, 2  ;;  %v1022_v26 = vor.u32 %v1021_v39, %v1018_v9  ;;  %v1324_v51 = vpop.permute.xlu2 %1323  ;;  %v1713_v9 = vld [vmem:[%s2249_s18 + $0xc] sm:$0xe]  ;;  %v1766_v39 = vld [vmem:[%s2249_s18 + $0xc] sm:$0xf0] }
  0xdf   : > { %v1717_v40 = vld [vmem:[%s2249_s18 + $0x14] sm:$0xf]  ;;  %v1767_v49 = vld [vmem:[%s2249_s18 + $0x14] sm:$0x70] }
  0xe0   : > { %v1015_v43 = vor.u32 %v1014_v42, %v1011_v41  ;;  %v1278_v46 = vpop.permute.xlu1 %1277  ;;  %v1684_v41 = vor.u32 %v1761_v38, %v1683_v18  ;;  %v1714_v42 = vor.u32 %v1766_v39, %v1713_v9 }
  0xe1   : > { %v1406_v60 = vsel %vm553_vm7, %v1401_v58, %v1278_v46 }
  0xe2   : > { %v1258_v35 = vpop.permute.xlu0 %1257  ;;  %v1023_v47 = vsel %vm452_vm2, %v1015_v43, %v1022_v26  ;;  %v1095_v43 = vshrl.u32 %v1714_v42, 16  ;;  %v1098_v46 = vshll.u32 %v1714_v42, 16 }
  0xe3   : > { %1707 = vmatmul.msk.bf16.vlgmr.msra.gmra.mxu3 %vm618_vm14, %v1023_v47  ;;  %v1404_v61 = vsel %vm548_vm6, %v1229_v55, %v1258_v35 }
  0xe4   : > { %v1408_v63 = vsel %vm553_vm7, %v1404_v61, %v1280_v32 }
  0xe6   : > { %v1350_v54 = vpop.permute.xlu2 %1349 }
  0xe8   : > { %v1296_v52 = vpop.permute.xlu1 %1295 }
  0xe9   : > { %v1412_v1 = vsel %vm558_vm8, %v1408_v63, %v1296_v52  ;;  %v1100_v52 = vrot.slane %v1098_v46, 2 }
  0xea   : > { %v1294_v7 = vpop.permute.xlu0 %1293 }
  0xeb   : > { %v1410_v62 = vsel %vm558_vm8, %v1406_v60, %v1294_v7  ;;  %vm1148_vm8 = vsmask.f32 5392 }
  0xec   : > { %v1414_v0 = vsel %vm563_vm9, %v1410_v62, %v1324_v51  ;;  %v1097_v51 = vrot.slane %v1095_v43, 1 }
  0xee   : > { %v1388_v59 = vpop.permute.xlu2 %1387 }
  0xf0   : > { %v1348_v12 = vpop.permute.xlu1 %1347 }
  0xf1   : > { %v1418_v30 = vsel %vm568_vm10, %v1414_v0, %v1348_v12 }
  0xf2   : > { %v1326_v48 = vpop.permute.xlu0 %1325 }
  0xf3   : > { %1708 = vmatmul.msk.bf16.gmra.mxu3 %vm618_vm14, %v1022_v26  ;;  %v1416_v2 = vsel %vm563_vm9, %v1412_v1, %v1326_v48  ;;  %v1718_v26 = vor.u32 %v1767_v49, %v1717_v40  ;;  %v1101_v48 = vor.u32 %v1100_v52, %v1097_v51 }
  0xf4   : > { %v1420_v5 = vsel %vm568_vm10, %v1416_v2, %v1350_v54  ;;  %vm1200_vm10 = vcmask 256000  }
  0xf5   : > { %v1103_v35 = vshrl.u32 %v1718_v26, 16  ;;  %v1106_v47 = vshll.u32 %v1718_v26, 16 }
  0xf6   : > { %v1399_v8 = vpop.permute.xlu2 %1398 }
  0xf7   : > { %v1105_v7 = vrot.slane %v1103_v35, 1  ;;  %v1108_v54 = vrot.slane %v1106_v47, 2 }
  0xf8   : > { %v1377_v53 = vpop.permute.xlu1 %1376 }
  0xf9   : > { %v1424_v10 = vsel %vm573_vm11, %v1420_v5, %v1377_v53  ;;  %v1109_v55 = vor.u32 %v1108_v54, %v1105_v7  ;;  %v1494_v5 = vld [vmem:[%s2249_s18 + $0x20] sm:$0xf] }
  0xfa   : > { %v1375_v57 = vpop.permute.xlu0 %1374 }
  0xfb   : > { %v1422_v31 = vsel %vm573_vm11, %v1418_v30, %v1375_v57  ;;  %vm1554_vm11 = vcmask 257027  }
  0xfc   : > { %v1426_v6 = vsel %vm578_vm12, %v1422_v31, %v1388_v59  ;;  %v1110_v59 = vsel %vm452_vm2, %v1101_v48, %v1109_v55  ;;  %vm748_vm2 = vsmask.f32 1280 }
  0xfd   : > { %vm749_vm3 = vmand %vm747_vm1, %vm748_vm2 }
  0xfe   : > { %vm2323_vm9 = vmor %vm748_vm2, %vm1148_vm8 }
 0x100   : > { %v1397_v3 = vpop.permute.xlu1 %1396 }
 0x101   : > { %v1430_v11 = vsel %vm583_vm13, %v1426_v6, %v1397_v3 }
 0x102   : > { %v1390_v13 = vpop.permute.xlu0 %1389  ;;  %v1436_v16 = vrot.slane %v1430_v11, 3  ;;  %v1772_v11 = vld [vmem:[%s2249_s18 + $0x18] sm:$0xf0] }
 0x103   : > { %v1428_v14 = vsel %vm578_vm12, %v1424_v10, %v1390_v13  ;;  %v1743_v10 = vld [vmem:[%s2249_s18 + $0x18] sm:$0x8]  ;;  %vm1542_vm12 = vcmask 1046532  }
 0x104   : > { %v1432_v4 = vsel %vm583_vm13, %v1428_v14, %v1399_v8  ;;  %v1500_v8 = vunpack.c.l.b16 %v1494_v5  ;;  %v1744_v13 = vor.u32 %v1772_v11, %v1743_v10  ;;  %vm1543_vm13 = vmor %vm1289_vm4, %vm1542_vm12 }
 0x105   : > { %v1437_v17 = vrot.slane %v1432_v4, 3 }
 0x106   : > { %v1502_v14 = vpack.c.b16 %v1500_v8, %v1500_v8 }
 0x107   : > { %v1438_v19 = vsel %vm1435_vm15, %v1436_v16, %v1437_v17 }
 0x108   : > { %1737 = vmatmul.msk.bf16.vlgmr.msrb.gmra.mxu0 %vm618_vm14, %v1438_v19  ;;  %v1503_v19 = vrot.slane %v1744_v13, 3  ;;  %v1504_v15 = vrot.slane %v1502_v14, 3 }
 0x118   : > { %1738 = vmatmul.msk.bf16.gmra.mxu0 %vm618_vm14, %v1437_v17 }
 0x11f   : > { %v636_v36 = vpop.f32.mrf.mxu0 }
 0x120   : > { %v637_v25 = vadd.f32 %v2235_v24, %v636_v36 }
 0x122   : > { %v646_v50 = vmax.f32 %v637_v25, 0.0  ;;  %v1505_v25 = vsel %vm1435_vm15, %v1503_v19, %v1504_v15 }
 0x127   : > { %v638_v20 = vpop.f32.mrf.mxu0 }
 0x128   : > { %v639_v45 = vadd.f32 %v2235_v24, %v638_v20 }
 0x12a   : > { %v647_v56 = vmax.f32 %v639_v45, 0.0 }
 0x12c   : > { %v650_v34 = vpack.c.bf16 %v647_v56, %v646_v50 }
 0x12e   : > { %1675 = vmatmul.msk.bf16.vlgmr.msra.gmra.mxu1 %vm548_vm6, %v650_v34 }
 0x12f   : > { %1519 = vmatpush.bf16.msra.mxu1 %v1753_v22 }
 0x131   : > { %v641_v27 = vpop.f32.mrf.mxu0 }
 0x132   : > { %v642_v28 = vadd.f32 %v2235_v24, %v641_v27 }
 0x134   : > { %v648_v32 = vmax.f32 %v642_v28, 0.0 }
 0x139   : > { %v643_v29 = vpop.f32.mrf.mxu0 }
 0x13a   : > { %v644_v23 = vadd.f32 %v2235_v24, %v643_v29 }
 0x13c   : > { %v649_v33 = vmax.f32 %v644_v23, 0.0  ;;  %v2283_v23 = vld [vmem:[%s2359_s4] ss:$0 sm:$0xff] }
 0x13e   : > { %v651_v44 = vpack.c.bf16 %v649_v33, %v648_v32 }
 0x140   : > { %1676 = vmatmul.msk.bf16.vlgmr.msra.gmra.mxu2 %vm548_vm6, %v651_v44 }
 0x141   : > { %1124 = vmatpush.bf16.msra.mxu2 %v1753_v22 }
 0x150   : > { %1689 = vmatmul.msk.bf16.vlgmr.msrb.gmra.mxu2 %vm553_vm7, %v1760_v37 }
 0x160   : > { %1690 = vmatmul.msk.bf16.gmra.mxu2 %vm553_vm7, %v1684_v41 }
 0x166   : > { %v1039_v12 = vpop.f32.mrf.mxu3 }
 0x167   : > { %v1040_v58 = vadd.f32 %v2235_v24, %v1039_v12 }
 0x169   : > { %v1049_v61 = vmax.f32 %v1040_v58, 0.0  ;;  %v750_v58 = vld [vmem:[%s2297_s25 + $0xc] sm:$0x3] }
 0x16e   : > { %v1041_v60 = vpop.f32.mrf.mxu3 }
 0x16f   : > { %v1042_v53 = vadd.f32 %v2235_v24, %v1041_v60 }
 0x170   : > { %1719 = vmatmul.msk.bf16.vlgmr.msra.gmra.mxu2 %vm553_vm7, %v1110_v59 }
 0x171   : > { %v1050_v62 = vmax.f32 %v1042_v53, 0.0 }
 0x173   : > { %v1053_v57 = vpack.c.bf16 %v1050_v62, %v1049_v61 }
 0x175   : > { %1709 = vmatmul.msk.bf16.vlgmr.msrb.gmra.mxu1 %vm548_vm6, %v1053_v57 }
 0x176   : > { %v1044_v63 = vpop.f32.mrf.mxu3 }
 0x177   : > { %v1045_v0 = vadd.f32 %v2235_v24, %v1044_v63 }
 0x179   : > { %v1051_v2 = vmax.f32 %v1045_v0, 0.0 }
 0x17e   : > { %v1046_v1 = vpop.f32.mrf.mxu3 }
 0x17f   : > { %v1047_v30 = vadd.f32 %v2235_v24, %v1046_v1 }
 0x180   : > { %1720 = vmatmul.msk.bf16.gmra.mxu2 %vm553_vm7, %v1109_v55 }
 0x181   : > { %v1052_v31 = vmax.f32 %v1047_v30, 0.0 }
 0x183   : > { %v1054_v3 = vpack.c.bf16 %v1052_v31, %v1051_v2 }
 0x185   : > { %1710 = vmatmul.msk.bf16.gmra.mxu1 %vm548_vm6, %v1054_v3  ;;  %v1454_v6 = vpop.f32.mrf.mxu0 }
 0x186   : > { %v1455_v4 = vadd.f32 %v2235_v24, %v1454_v6 }
 0x188   : > { %v1463_v21 = vmax.f32 %v1455_v4, 0.0 }
 0x18d   : > { %v1456_v16 = vpop.f32.mrf.mxu0 }
 0x18e   : > { %v1457_v17 = vadd.f32 %v2235_v24, %v1456_v16 }
 0x190   : > { %v1464_v36 = vmax.f32 %v1457_v17, 0.0 }
 0x192   : > { %v1466_v22 = vpack.c.bf16 %v1464_v36, %v1463_v21 }
 0x194   : > { %1739 = vmatmul.msk.bf16.vlgmr.msrb.gmra.mxu3 %vm548_vm6, %v1466_v22 }
 0x195   : > { %v1459_v20 = vpop.f32.mrf.mxu0  ;;  %1745 = vmatmul.msk.bf16.vlgmr.msra.gmra.mxu1 %vm553_vm7, %v1505_v25 }
 0x196   : > { %v1460_v45 = vadd.f32 %v2235_v24, %v1459_v20  ;;  %v2288_v24 = vld [vmem:[%s2362_s7] ss:$0 sm:$0xff] }
 0x198   : > { %v1465_v56 = vmax.f32 %v1460_v45, 0.0 }
 0x19a   : > { %v1467_v34 = vpack.c.bf16 %v1465_v56, %v1465_v56 }
 0x19d   : > { %v1461_v50 = vpop.f32.mrf.mxu0 }
 0x1a4   : > { %1740 = vmatmul.msk.bf16.gmra.mxu3 %vm548_vm6, %v1467_v34  ;;  %vm1193_vm6 = vsmask.f32 7942 }
 0x1a5   : > { %1746 = vmatmul.msk.bf16.gmra.mxu1 %vm553_vm7, %v1504_v15  ;;  %vm1194_vm7 = vmand %vm1192_vm5, %vm1193_vm6 }
 0x1ab   : > { %v673_v29 = vpop.f32.mrf.mxu1 }
 0x1ac   : > { %v674_v33 = vadd.f32 %v2283_v23, %v673_v29 }
 0x1b3   : > { %v675_v38 = vpop.f32.mrf.mxu1 }
 0x1b4   : > { %v676_v40 = vadd.f32 %v2283_v23, %v675_v38 }
 0x1c3   : > { %v678_v27 = vpop.f32.mrf.mxu2 }
 0x1c4   : > { %v679_v46 = vadd.f32 %v2283_v23, %v678_v27 }
 0x1cb   : > { %v680_v28 = vpop.f32.mrf.mxu2 }
 0x1cc   : > { %v681_v54 = vadd.f32 %v2283_v23, %v680_v28 }
 0x1d3   : > { %v721_v32 = vpop.f32.mrf.mxu2 }
 0x1d4   : > { %v722_v44 = vadd.f32 %v2288_v24, %v721_v32 }
 0x1d6   : > { %v731_v37 = vadd.f32 %v722_v44, %v674_v33 }
 0x1d8   : > { %v735_v18 = vmax.f32 %v731_v37, 0.0 }
 0x1da   : > { %v739_v9 = vpack.c.bf16 %v735_v18, %v735_v18 }
 0x1db   : > { %v723_v39 = vpop.f32.mrf.mxu2 }
 0x1dc   : > { %744 = vst.msk [vmem:[%s2297_s25] sm:$0xf] %vm743_vm0, %v739_v9  ;;  %v724_v49 = vadd.f32 %v2288_v24, %v723_v39 }
 0x1de   : > { %v732_v41 = vadd.f32 %v724_v49, %v676_v40 }
 0x1e0   : > { %v736_v42 = vmax.f32 %v732_v41, 0.0 }
 0x1e2   : > { %v740_v26 = vpack.c.bf16 %v736_v42, %v736_v42 }
 0x1e3   : > { %v726_v43 = vpop.f32.mrf.mxu2 }
 0x1e4   : > { %745 = vst.msk [vmem:[%s2297_s25 + $0x4] sm:$0xf] %vm743_vm0, %v740_v26  ;;  %v727_v35 = vadd.f32 %v2288_v24, %v726_v43 }
 0x1e6   : > { %v733_v47 = vadd.f32 %v727_v35, %v679_v46 }
 0x1e8   : > { %v737_v51 = vmax.f32 %v733_v47, 0.0 }
 0x1ea   : > { %v741_v52 = vpack.c.bf16 %v737_v51, %v737_v51 }
 0x1eb   : > { %v728_v7 = vpop.f32.mrf.mxu2 }
 0x1ec   : > { %746 = vst.msk [vmem:[%s2297_s25 + $0x8] sm:$0xf] %vm743_vm0, %v741_v52  ;;  %v729_v12 = vadd.f32 %v2288_v24, %v728_v7 }
 0x1ee   : > { %v734_v48 = vadd.f32 %v729_v12, %v681_v54 }
 0x1f0   : > { %v738_v55 = vmax.f32 %v734_v48, 0.0 }
 0x1f2   : > { %v742_v59 = vpack.c.bf16 %v738_v55, %v738_v55  ;;  %v1070_v60 = vpop.f32.mrf.mxu1 }
 0x1f3   : > { %v1071_v53 = vadd.f32 %v2283_v23, %v1070_v60  ;;  %v1126_v61 = vpop.f32.mrf.mxu2 }
 0x1f4   : > { %v751_v62 = vsel %vm749_vm3, %v742_v59, %v750_v58  ;;  %v1127_v57 = vadd.f32 %v2288_v24, %v1126_v61 }
 0x1f5   : > { %752 = vst [vmem:[%s2297_s25 + $0xc] sm:$0x3] %v751_v62 }
 0x1f6   : > { %v1136_v63 = vadd.f32 %v1127_v57, %v1071_v53 }
 0x1f8   : > { %v1140_v0 = vmax.f32 %v1136_v63, 0.0 }
 0x1fa   : > { %v1144_v1 = vpack.c.bf16 %v1140_v0, %v1140_v0  ;;  %v1072_v30 = vpop.f32.mrf.mxu1 }
 0x1fb   : > { %v1073_v2 = vadd.f32 %v2283_v23, %v1072_v30  ;;  %v1128_v31 = vpop.f32.mrf.mxu2 }
 0x1fc   : > { %v1151_v3 = vshrl.u32 %v1144_v1, 16  ;;  %v1154_v5 = vshll.u32 %v1144_v1, 16  ;;  %v1129_v6 = vadd.f32 %v2288_v24, %v1128_v31  ;;  %v1195_v4 = vld [vmem:[%s2297_s25 + $0xc] sm:$0xe] }
 0x1fe   : > { %v1153_v8 = vrot.slane %v1151_v3, 6  ;;  %v1156_v10 = vrot.slane %v1154_v5, 7  ;;  %v1137_v11 = vadd.f32 %v1129_v6, %v1073_v2 }
 0x200   : > { %v1157_v13 = vor.u32 %v1156_v10, %v1153_v8  ;;  %v1141_v14 = vmax.f32 %v1137_v11, 0.0 }
 0x202   : > { %v1196_v16 = vsel %vm1194_vm7, %v1157_v13, %v1195_v4  ;;  %v1145_v17 = vpack.c.bf16 %v1141_v14, %v1141_v14  ;;  %v1075_v19 = vpop.f32.mrf.mxu1  ;;  %v1158_v34 = vrot.slane %v1157_v13, 4 }
 0x203   : > { %1197 = vst [vmem:[%s2297_s25 + $0xc] sm:$0xe] %v1196_v16  ;;  %v1076_v15 = vadd.f32 %v2283_v23, %v1075_v19  ;;  %v1131_v21 = vpop.f32.mrf.mxu2 }
 0x204   : > { %v1160_v36 = vshrl.u32 %v1145_v17, 16  ;;  %v1163_v22 = vshll.u32 %v1145_v17, 16  ;;  %v1132_v25 = vadd.f32 %v2288_v24, %v1131_v21 }
 0x206   : > { %v1162_v20 = vrot.slane %v1160_v36, 6  ;;  %v1165_v45 = vrot.slane %v1163_v22, 7  ;;  %v1138_v50 = vadd.f32 %v1132_v25, %v1076_v15 }
 0x208   : > { %v1166_v27 = vor.u32 %v1165_v45, %v1162_v20  ;;  %v1142_v28 = vmax.f32 %v1138_v50, 0.0 }
 0x20a   : > { %v1167_v29 = vsel %vm2323_vm9, %v1158_v34, %v1166_v27  ;;  %v1146_v32 = vpack.c.bf16 %v1142_v28, %v1142_v28  ;;  %v1077_v33 = vpop.f32.mrf.mxu1  ;;  %v1168_v41 = vrot.slane %v1166_v27, 4 }
 0x20b   : > { %1198 = vst.msk [vmem:[%s2297_s25 + $0x10] sm:$0xf] %vm743_vm0, %v1167_v29  ;;  %v1078_v44 = vadd.f32 %v2283_v23, %v1077_v33  ;;  %v1133_v37 = vpop.f32.mrf.mxu2 }
 0x20c   : > { %v1170_v18 = vshrl.u32 %v1146_v32, 16  ;;  %v1173_v38 = vshll.u32 %v1146_v32, 16  ;;  %v1134_v9 = vadd.f32 %v2288_v24, %v1133_v37 }
 0x20e   : > { %v1172_v39 = vrot.slane %v1170_v18, 6  ;;  %v1175_v40 = vrot.slane %v1173_v38, 7  ;;  %v1139_v49 = vadd.f32 %v1134_v9, %v1078_v44 }
 0x210   : > { %v1176_v42 = vor.u32 %v1175_v40, %v1172_v39  ;;  %v1143_v26 = vmax.f32 %v1139_v49, 0.0 }
 0x212   : > { %v1177_v43 = vsel %vm2323_vm9, %v1168_v41, %v1176_v42  ;;  %v1147_v46 = vpack.c.bf16 %v1143_v26, %v1143_v26  ;;  %v1521_v35 = vpop.f32.mrf.mxu1  ;;  %v1178_v48 = vrot.slane %v1176_v42, 4 }
 0x213   : > { %1199 = vst.msk [vmem:[%s2297_s25 + $0x14] sm:$0xf] %vm743_vm0, %v1177_v43  ;;  %v1522_v54 = vadd.f32 %v2288_v24, %v1521_v35 }
 0x214   : > { %v1180_v47 = vshrl.u32 %v1147_v46, 16  ;;  %v1183_v51 = vshll.u32 %v1147_v46, 16 }
 0x216   : > { %v1182_v52 = vrot.slane %v1180_v47, 6  ;;  %v1185_v7 = vrot.slane %v1183_v51, 7 }
 0x217   : > { %v1483_v12 = vpop.f32.mrf.mxu3 }
 0x218   : > { %v1186_v55 = vor.u32 %v1185_v7, %v1182_v52  ;;  %v1484_v58 = vadd.f32 %v2283_v23, %v1483_v12 }
 0x21a   : > { %v1187_v59 = vsel %vm2323_vm9, %v1178_v48, %v1186_v55  ;;  %v1530_v60 = vadd.f32 %v1522_v54, %v1484_v58  ;;  %v1523_v53 = vpop.f32.mrf.mxu1 }
 0x21b   : > { %1201 = vst.msk [vmem:[%s2297_s25 + $0x18] sm:$0x7] %vm1200_vm10, %v1187_v59  ;;  %v1524_v0 = vadd.f32 %v2288_v24, %v1523_v53 }
 0x21c   : > { %v1533_v61 = vmax.f32 %v1530_v60, 0.0 }
 0x21e   : > { %v1536_v62 = vpack.c.bf16 %v1533_v61, %v1533_v61 }
 0x21f   : > { %v1485_v57 = vpop.f32.mrf.mxu3 }
 0x220   : > { %v1544_v63 = vrot.slane %v1536_v62, 5  ;;  %v1486_v1 = vadd.f32 %v2283_v23, %v1485_v57 }
 0x222   : > { %1555 = vst.msk [vmem:[%s2297_s25 + $0x18] sm:$0x8] %vm1554_vm11, %v1544_v63  ;;  %v1531_v30 = vadd.f32 %v1524_v0, %v1486_v1  ;;  %v1526_v2 = vpop.f32.mrf.mxu1  ;;  %v1545_v8 = vrot.slane %v1544_v63, 4 }
 0x223   : > { %v1527_v5 = vadd.f32 %v2288_v24, %v1526_v2 }
 0x224   : > { %v1534_v31 = vmax.f32 %v1531_v30, 0.0 }
 0x226   : > { %v1537_v3 = vpack.c.bf16 %v1534_v31, %v1534_v31 }
 0x227   : > { %v1488_v6 = vpop.f32.mrf.mxu3 }
 0x228   : > { %v1546_v10 = vrot.slane %v1537_v3, 5  ;;  %v1489_v11 = vadd.f32 %v2283_v23, %v1488_v6 }
 0x22a   : > { %v1547_v13 = vsel %vm1543_vm13, %v1545_v8, %v1546_v10  ;;  %v1532_v14 = vadd.f32 %v1527_v5, %v1489_v11  ;;  %v1528_v4 = vpop.f32.mrf.mxu1  ;;  %v1548_v15 = vrot.slane %v1546_v10, 4 }
 0x22b   : > { %1556 = vst.msk [vmem:[%s2297_s25 + $0x1c] sm:$0xf] %vm743_vm0, %v1547_v13 }
 0x22c   : > { %v1535_v16 = vmax.f32 %v1532_v14, 0.0 }
 0x22e   : > { %v1538_v17 = vpack.c.bf16 %v1535_v16, %v1535_v16 }
 0x22f   : > { %v1490_v19 = vpop.f32.mrf.mxu3 }
 0x230   : > { %v1549_v21 = vrot.slane %v1538_v17, 5 }
 0x232   : > { %v1550_v36 = vsel %vm1543_vm13, %v1548_v15, %v1549_v21 }
 0x233   : > { %1557 = vst.msk [vmem:[%s2297_s25 + $0x20] sm:$0xf] %vm743_vm0, %v1550_v36 }
 0x234 PF: > { %s18_s27 = sadd.s32 1, %s1822_s27  }
 0x235   : > { %p15_p4 = scmp.ge.s32.totalorder %s18_s27, 4  }
 0x237   :  { %17 = sbr.rel (!%p15_p4) target bundleno = 1 (0x1), region = 85 }

</bundles_post_ra>
